<compile_context>
chip_gen: v7x
topology: tpu7x:2x2x1
jax: 0.10.0
libtpu: 0.0.40
codegen_flags: <defaults>
</compile_context>

<pallas_src>
import numpy as np
import jax
import jax.numpy as jnp
from jax import lax
from jax.experimental import pallas as pl
from jax.experimental.pallas import tpu as pltpu

# ----------------------------- model sizes (small, consistent with the module) ---------------
VOCAB = 50          # vocab_size
D = 32              # word_embed_dim  (input_dim, since use_char=False)
H = 32              # word_hidden_dim
TAGS = 8            # tag_num          (no CRF -> hidden2tag outputs tag_num)
MOG = 2             # mogrifier rounds (round 1 modulates x, round 2 modulates h)
B = 2               # batch
T = 8               # seq_len

D2 = 2 * D          # 64  : fused (fwd|bwd) input width
H2 = 2 * H          # 64  : fused (fwd|bwd) hidden width
GW = 8 * H          # 256 : fused gate width (4 gates x 2 directions)

# ----------------------------- packed-parameter slab layout ----------------------------------
ROW_WX = 0                  # rows [0,   64)  : Wx_blk  [2D, 8H]   (block-diag, gate-interleaved)
ROW_WH = D2                 # rows [64, 128)  : Wh_blk  [2H, 8H]
ROW_QRT = D2 + H2           # rows [128,192)  : Q_blk | R_blk | Wt_f_pad | Wt_b_pad
ROW_B = 192                 # row  192        : fused gate bias [8H]
ROW_BT = 193                # row  193        : tag bias [TAGS]
SLAB_ROWS = 200             # multiple of 8
SLAB_COLS = GW              # 256 (multiple of 128 -> lane dense, no DMA padding)
COL_Q = 0                   # cols [0,   64)  of rows 128:192 : Q_blk [2H, 2D]
COL_R = D2                  # cols [64, 128)                  : R_blk [2D, 2H]
COL_WTF = D2 + H2           # cols [128,136)                  : Wt_f  (zero-padded to [2H, TAGS])
COL_WTB = COL_WTF + TAGS    # cols [136,144)                  : Wt_b  (zero-padded to [2H, TAGS])


# ----------------------------- Pallas kernel -------------------------------------------------
def ner_kernel(x_ref, mask_ref, slab_ref, out_ref, hsf_ref, hsb_ref):
    """Fused bidirectional Mogrifier-LSTM + linear tag projection + argmax + mask.

    x_ref:    [T, B, D]        f32 word embeddings (dropout = identity in eval)
    mask_ref: [T, B]           i32
    slab_ref: [200, 256]       f32 packed parameters (see layout constants above)
    out_ref:  [T, B]           i32 tag ids (masked)
    hsf_ref:  [T, B, 2H]       f32 scratch; [t, :, :H] holds forward hidden at time t
    hsb_ref:  [T, B, 2H]       f32 scratch; [t, :, H:] holds backward hidden at time t
    """
    # --- one-time parameter loads / hoisted broadcast ---
    q_blk = slab_ref[ROW_QRT:ROW_QRT + H2, COL_Q:COL_Q + D2]      # [2H, 2D]
    r_blk = slab_ref[ROW_QRT:ROW_QRT + D2, COL_R:COL_R + H2]      # [2D, 2H]
    b_gate = jnp.broadcast_to(slab_ref[ROW_B:ROW_B + 1, :], (B, GW))   # [B, 8H], hoisted

    # fused state: lanes [0:H) = forward direction, [H:2H) = backward direction
    h = jnp.zeros((B, H2), jnp.float32)
    c = jnp.zeros((B, H2), jnp.float32)

    # --- statically-unrolled recurrence over time (T = 8 is a compile-time constant) ---
    for s in range(T):
        wx = slab_ref[ROW_WX:ROW_WX + D2, :]                      # [2D, 8H]
        wh = slab_ref[ROW_WH:ROW_WH + H2, :]                      # [2H, 8H]

        # fused input: forward sees x[s], backward sees x[T-1-s]
        x_t = jnp.concatenate([x_ref[s], x_ref[T - 1 - s]], axis=-1)   # [B, 2D]

        # Mogrifier rounds (MOG = 2): round 1 modulates x, round 2 modulates h
        xm = 2.0 * jax.nn.sigmoid(
            jnp.dot(h, q_blk, preferred_element_type=jnp.float32)) * x_t
        hm = 2.0 * jax.nn.sigmoid(
            jnp.dot(xm, r_blk, preferred_element_type=jnp.float32)) * h

        # LSTM cell: one block-diagonal matmul pair covers both directions
        z = (jnp.dot(xm, wx, preferred_element_type=jnp.float32)
             + jnp.dot(hm, wh, preferred_element_type=jnp.float32)
             + b_gate)                                            # [B, 8H]
        sg = jax.nn.sigmoid(z)                                    # full-width EUP
        i_g = sg[:, 0:H2]
        f_g = sg[:, H2:2 * H2]
        g_g = jnp.tanh(z[:, 2 * H2:3 * H2])                       # vreg-aligned slice
        o_g = sg[:, 3 * H2:4 * H2]
        c = f_g * c + i_g * g_g
        h = o_g * jnp.tanh(c)

        # store full fused state; forward half is time-s aligned, backward half is (T-1-s) aligned
        hsf_ref[s] = h
        hsb_ref[T - 1 - s] = h

    # --- hidden2tag: two zero-padded dots (no lane concat) + bias ---
    wt_f = slab_ref[ROW_QRT:ROW_QRT + H2, COL_WTF:COL_WTF + TAGS]  # [2H, TAGS], rows H:2H zero
    wt_b = slab_ref[ROW_QRT:ROW_QRT + H2, COL_WTB:COL_WTB + TAGS]  # [2H, TAGS], rows 0:H zero
    b_tag = slab_ref[ROW_BT:ROW_BT + 1, 0:TAGS]                    # [1, TAGS]

    dn = (((2,), (0,)), ((), ()))
    logits = (lax.dot_general(hsf_ref[...], wt_f, dn, preferred_element_type=jnp.float32)
              + lax.dot_general(hsb_ref[...], wt_b, dn, preferred_element_type=jnp.float32)
              + b_tag[None])                                       # [T, B, TAGS]

    # argmax over tags (first-max index, like torch.max), then mask
    maxv = jnp.max(logits, axis=-1, keepdims=True)
    ids = lax.broadcasted_iota(jnp.int32, logits.shape, 2)
    cand = jnp.where(logits >= maxv, ids, TAGS)
    tag = jnp.min(cand, axis=-1).astype(jnp.int32)                 # [T, B]
    out_ref[...] = mask_ref[...] * tag


@jax.jit
def ner_forward(slab, embed_tbl, word_inputs, mask):
    """word_inputs: [B, T] int32, mask: [B, T] int32 -> tag_seq [B, T] int32."""
    emb = embed_tbl[word_inputs]                            # [B, T, D] (padding_idx=0 row is zero)
    x_tm = jnp.transpose(emb, (1, 0, 2))                    # [T, B, D]  (fused into the jit)
    mask_tm = jnp.transpose(mask, (1, 0)).astype(jnp.int32)

    vmem = pl.BlockSpec(memory_space=pltpu.MemorySpace.VMEM)
    out_tm = pl.pallas_call(
        ner_kernel,
        out_shape=jax.ShapeDtypeStruct((T, B), jnp.int32),
        in_specs=[vmem, vmem, vmem],
        out_specs=vmem,
        scratch_shapes=[pltpu.VMEM((T, B, H2), jnp.float32),
                        pltpu.VMEM((T, B, H2), jnp.float32)],
    )(x_tm, mask_tm, slab)
    return jnp.transpose(out_tm, (1, 0))                    # [B, T]


# ----------------------------- host-side parameter packing (done once) -----------------------
def pack_params(p):
    f32 = np.float32
    wih_f = np.asarray(p["wih_f"]); wih_b = np.asarray(p["wih_b"])
    whh_f = np.asarray(p["whh_f"]); whh_b = np.asarray(p["whh_b"])
    b_f = np.asarray(p["b_f"])[0]; b_b = np.asarray(p["b_b"])[0]

    wx_blk = np.zeros((D2, GW), f32)
    wh_blk = np.zeros((H2, GW), f32)
    b_cat = np.zeros((GW,), f32)
    for k in range(4):                                   # gate order (i, f, g, o)
        cf = slice(k * H2, k * H2 + H)                   # forward columns of gate k
        cb = slice(k * H2 + H, (k + 1) * H2)             # backward columns of gate k
        src = slice(k * H, (k + 1) * H)
        wx_blk[0:D, cf] = wih_f[:, src]
        wx_blk[D:D2, cb] = wih_b[:, src]
        wh_blk[0:H, cf] = whh_f[:, src]
        wh_blk[H:H2, cb] = whh_b[:, src]
        b_cat[cf] = b_f[src]
        b_cat[cb] = b_b[src]

    q_blk = np.zeros((H2, D2), f32)
    q_blk[0:H, 0:D] = np.asarray(p["qf"])
    q_blk[H:H2, D:D2] = np.asarray(p["qb"])
    r_blk = np.zeros((D2, H2), f32)
    r_blk[0:D, 0:H] = np.asarray(p["rf"])
    r_blk[D:D2, H:H2] = np.asarray(p["rb"])

    w_tag = np.asarray(p["w_tag"])
    wt_f = np.zeros((H2, TAGS), f32); wt_f[0:H] = w_tag[0:H]
    wt_b = np.zeros((H2, TAGS), f32); wt_b[H:H2] = w_tag[H:H2]

    slab = np.zeros((SLAB_ROWS, SLAB_COLS), f32)
    slab[ROW_WX:ROW_WX + D2, :] = wx_blk
    slab[ROW_WH:ROW_WH + H2, :] = wh_blk
    slab[ROW_QRT:ROW_QRT + H2, COL_Q:COL_Q + D2] = q_blk
    slab[ROW_QRT:ROW_QRT + D2, COL_R:COL_R + H2] = r_blk
    slab[ROW_QRT:ROW_QRT + H2, COL_WTF:COL_WTF + TAGS] = wt_f
    slab[ROW_QRT:ROW_QRT + H2, COL_WTB:COL_WTB + TAGS] = wt_b
    slab[ROW_B, :] = b_cat
    slab[ROW_BT, 0:TAGS] = np.asarray(p["b_tag"])[0]
    return jnp.asarray(slab)


# ----------------------------- pure-JAX reference (same math, unpacked params) ----------------
def ner_reference(params, word_inputs, mask):
    emb = params["embed"][word_inputs]                         # [B, T, D]
    x_tm = jnp.transpose(emb, (1, 0, 2))

    def run_dir(q, r, wih, whh, b, reverse):
        def step(carry, x_t):
            h, c = carry
            x_t = 2.0 * jax.nn.sigmoid(h @ q) * x_t
            h = 2.0 * jax.nn.sigmoid(x_t @ r) * h
            z = x_t @ wih + h @ whh + b
            i_g = jax.nn.sigmoid(z[:, 0:H])
            f_g = jax.nn.sigmoid(z[:, H:2 * H])
            g_g = jnp.tanh(z[:, 2 * H:3 * H])
            o_g = jax.nn.sigmoid(z[:, 3 * H:4 * H])
            c = f_g * c + i_g * g_g
            h = o_g * jnp.tanh(c)
            return (h, c), h
        xs = x_tm[::-1] if reverse else x_tm
        init = (jnp.zeros((B, H), jnp.float32), jnp.zeros((B, H), jnp.float32))
        _, hs = lax.scan(step, init, xs)
        return hs[::-1] if reverse else hs

    hf = run_dir(params["qf"], params["rf"], params["wih_f"], params["whh_f"], params["b_f"], False)
    hb = run_dir(params["qb"], params["rb"], params["wih_b"], params["whh_b"], params["b_b"], True)
    feats = jnp.concatenate([hf, hb], axis=-1)                 # [T, B, 2H]
    logits = jnp.einsum("tbh,hk->tbk", feats, params["w_tag"]) + params["b_tag"][None]
    tag_seq = jnp.argmax(logits, axis=-1).astype(jnp.int32)    # [T, B]
    tag_seq = jnp.transpose(mask, (1, 0)).astype(jnp.int32) * tag_seq
    return jnp.transpose(tag_seq, (1, 0))


# ----------------------------- deterministic parameter init ----------------------------------
def init_params(key):
    ks = jax.random.split(key, 16)
    s = 0.1
    embed = jax.random.uniform(ks[0], (VOCAB, D), jnp.float32,
                               -np.sqrt(3.0 / D), np.sqrt(3.0 / D))
    embed = embed.at[0].set(0.0)                               # padding_idx=0
    p = {"embed": embed}
    names_f = ["qf", "rf", "wih_f", "whh_f"]
    names_b = ["qb", "rb", "wih_b", "whh_b"]
    shapes = [(H, D), (D, H), (D, 4 * H), (H, 4 * H)]
    for i, (n, sh) in enumerate(zip(names_f, shapes)):
        p[n] = s * jax.random.normal(ks[1 + i], sh, jnp.float32)
    for i, (n, sh) in enumerate(zip(names_b, shapes)):
        p[n] = s * jax.random.normal(ks[5 + i], sh, jnp.float32)
    p["b_f"] = s * jax.random.normal(ks[9], (1, 4 * H), jnp.float32)
    p["b_b"] = s * jax.random.normal(ks[10], (1, 4 * H), jnp.float32)
    p["w_tag"] = s * jax.random.normal(ks[11], (2 * H, TAGS), jnp.float32)
    p["b_tag"] = s * jax.random.normal(ks[12], (1, TAGS), jnp.float32)
    return p


if __name__ == "__main__":
    key = jax.random.PRNGKey(0)
    params = init_params(key)
    slab = pack_params(params)                                 # one-time packing

    k1, _ = jax.random.split(jax.random.PRNGKey(0), 2)
    # mask: 1 for real tokens, 0 for padding; padded positions get word id 0 (padding_idx).
    lengths = jnp.array([T, T - 3], dtype=jnp.int32)
    pos = jnp.arange(T)[None, :]
    mask = (pos < lengths[:, None]).astype(jnp.int32)          # [B, T]
    word_inputs = jax.random.randint(k1, (B, T), 1, VOCAB, dtype=jnp.int32) * mask  # [B, T]

    tag_seq = ner_forward(slab, params["embed"], word_inputs, mask)
    tag_seq = jax.block_until_ready(tag_seq)

    ref = np.asarray(ner_reference(params, word_inputs, mask))
    np.testing.assert_array_equal(np.asarray(tag_seq), ref)

    print("KERNEL_OK")
</pallas_src>

<mosaic_0001>
module attributes {stable_mosaic.version = 11 : i64} {
  func.func @ner_kernel(%arg0: memref<8x2x32xf32, #tpu.memory_space<vmem>>, %arg1: memref<8x2xi32, #tpu.memory_space<vmem>>, %arg2: memref<200x256xf32, #tpu.memory_space<vmem>>, %arg3: memref<8x2xi32, #tpu.memory_space<vmem>>, %arg4: memref<8x2x64xf32, #tpu.memory_space<vmem>>, %arg5: memref<8x2x64xf32, #tpu.memory_space<vmem>>) attributes {dimension_semantics = [], scalar_prefetch = 0 : i64, scratch_operands = 2 : i64, tpu.core_type = #tpu.core_type<tc>} {
    %c128 = arith.constant 128 : index
    %c0 = arith.constant 0 : index
    %0 = vector.load %arg2[%c128, %c0] : memref<200x256xf32, #tpu.memory_space<vmem>>, vector<64x64xf32>
    %c128_0 = arith.constant 128 : index
    %c64 = arith.constant 64 : index
    %1 = vector.load %arg2[%c128_0, %c64] : memref<200x256xf32, #tpu.memory_space<vmem>>, vector<64x64xf32>
    %c192 = arith.constant 192 : index
    %c0_1 = arith.constant 0 : index
    %2 = vector.load %arg2[%c192, %c0_1] : memref<200x256xf32, #tpu.memory_space<vmem>>, vector<1x256xf32>
    %3 = vector.shape_cast %2 : vector<1x256xf32> to vector<1x256xf32>
    %4 = vector.broadcast %3 : vector<1x256xf32> to vector<2x256xf32>
    %cst = arith.constant 0.000000e+00 : f32
    %5 = vector.broadcast %cst : f32 to vector<2x64xf32>
    %cst_2 = arith.constant 0.000000e+00 : f32
    %6 = vector.broadcast %cst_2 : f32 to vector<2x64xf32>
    %c0_3 = arith.constant 0 : index
    %c0_4 = arith.constant 0 : index
    %7 = vector.load %arg2[%c0_3, %c0_4] : memref<200x256xf32, #tpu.memory_space<vmem>>, vector<64x256xf32>
    %c64_5 = arith.constant 64 : index
    %c0_6 = arith.constant 0 : index
    %8 = vector.load %arg2[%c64_5, %c0_6] : memref<200x256xf32, #tpu.memory_space<vmem>>, vector<64x256xf32>
    %c0_7 = arith.constant 0 : index
    %c0_8 = arith.constant 0 : index
    %c0_9 = arith.constant 0 : index
    %9 = vector.load %arg0[%c0_7, %c0_8, %c0_9] : memref<8x2x32xf32, #tpu.memory_space<vmem>>, vector<1x2x32xf32>
    %10 = vector.shape_cast %9 : vector<1x2x32xf32> to vector<2x32xf32>
    %c7 = arith.constant 7 : index
    %c0_10 = arith.constant 0 : index
    %c0_11 = arith.constant 0 : index
    %11 = vector.load %arg0[%c7, %c0_10, %c0_11] : memref<8x2x32xf32, #tpu.memory_space<vmem>>, vector<1x2x32xf32>
    %12 = vector.shape_cast %11 : vector<1x2x32xf32> to vector<2x32xf32>
    %13 = tpu.concatenate %10, %12 in 1 : vector<2x32xf32>, vector<2x32xf32> -> vector<2x64xf32>
    %cst_12 = arith.constant dense<0.000000e+00> : vector<2x64xf32>
    %14 = tpu.matmul %5, %0, %cst_12 {dimension_numbers = #tpu.dot_dimension_numbers<[1], [0], [0], [1], [0, 0, 1, 1], [], []>} : vector<2x64xf32>, vector<64x64xf32>, vector<2x64xf32> -> vector<2x64xf32>
    %15 = arith.negf %14 : vector<2x64xf32>
    %16 = math.exp %15 : vector<2x64xf32>
    %cst_13 = arith.constant 1.000000e+00 : f32
    %17 = vector.broadcast %cst_13 : f32 to vector<2x64xf32>
    %18 = arith.addf %17, %16 : vector<2x64xf32>
    %19 = arith.divf %17, %18 : vector<2x64xf32>
    %cst_14 = arith.constant 2.000000e+00 : f32
    %20 = vector.broadcast %cst_14 : f32 to vector<2x64xf32>
    %21 = arith.mulf %20, %19 : vector<2x64xf32>
    %22 = arith.mulf %21, %13 : vector<2x64xf32>
    %cst_15 = arith.constant dense<0.000000e+00> : vector<2x64xf32>
    %23 = tpu.matmul %22, %1, %cst_15 {dimension_numbers = #tpu.dot_dimension_numbers<[1], [0], [0], [1], [0, 0, 1, 1], [], []>} : vector<2x64xf32>, vector<64x64xf32>, vector<2x64xf32> -> vector<2x64xf32>
    %24 = arith.negf %23 : vector<2x64xf32>
    %25 = math.exp %24 : vector<2x64xf32>
    %cst_16 = arith.constant 1.000000e+00 : f32
    %26 = vector.broadcast %cst_16 : f32 to vector<2x64xf32>
    %27 = arith.addf %26, %25 : vector<2x64xf32>
    %28 = arith.divf %26, %27 : vector<2x64xf32>
    %cst_17 = arith.constant 2.000000e+00 : f32
    %29 = vector.broadcast %cst_17 : f32 to vector<2x64xf32>
    %30 = arith.mulf %29, %28 : vector<2x64xf32>
    %31 = arith.mulf %30, %5 : vector<2x64xf32>
    %cst_18 = arith.constant dense<0.000000e+00> : vector<2x256xf32>
    %32 = tpu.matmul %22, %7, %cst_18 {dimension_numbers = #tpu.dot_dimension_numbers<[1], [0], [0], [1], [0, 0, 1, 1], [], []>} : vector<2x64xf32>, vector<64x256xf32>, vector<2x256xf32> -> vector<2x256xf32>
    %cst_19 = arith.constant dense<0.000000e+00> : vector<2x256xf32>
    %33 = tpu.matmul %31, %8, %cst_19 {dimension_numbers = #tpu.dot_dimension_numbers<[1], [0], [0], [1], [0, 0, 1, 1], [], []>} : vector<2x64xf32>, vector<64x256xf32>, vector<2x256xf32> -> vector<2x256xf32>
    %34 = arith.addf %32, %33 : vector<2x256xf32>
    %35 = arith.addf %34, %4 : vector<2x256xf32>
    %36 = arith.negf %35 : vector<2x256xf32>
    %37 = math.exp %36 : vector<2x256xf32>
    %cst_20 = arith.constant 1.000000e+00 : f32
    %38 = vector.broadcast %cst_20 : f32 to vector<2x256xf32>
    %39 = arith.addf %38, %37 : vector<2x256xf32>
    %40 = arith.divf %38, %39 : vector<2x256xf32>
    %41 = vector.extract_strided_slice %40 {offsets = [0, 0], sizes = [2, 64], strides = [1, 1]} : vector<2x256xf32> to vector<2x64xf32>
    %42 = vector.extract_strided_slice %40 {offsets = [0, 64], sizes = [2, 64], strides = [1, 1]} : vector<2x256xf32> to vector<2x64xf32>
    %43 = vector.extract_strided_slice %35 {offsets = [0, 128], sizes = [2, 64], strides = [1, 1]} : vector<2x256xf32> to vector<2x64xf32>
    %44 = math.tanh %43 : vector<2x64xf32>
    %45 = vector.extract_strided_slice %40 {offsets = [0, 192], sizes = [2, 64], strides = [1, 1]} : vector<2x256xf32> to vector<2x64xf32>
    %46 = arith.mulf %42, %6 : vector<2x64xf32>
    %47 = arith.mulf %41, %44 : vector<2x64xf32>
    %48 = arith.addf %46, %47 : vector<2x64xf32>
    %49 = math.tanh %48 : vector<2x64xf32>
    %50 = arith.mulf %45, %49 : vector<2x64xf32>
    %c0_21 = arith.constant 0 : index
    %c0_22 = arith.constant 0 : index
    %c0_23 = arith.constant 0 : index
    %51 = vector.load %arg4[%c0_21, %c0_22, %c0_23] : memref<8x2x64xf32, #tpu.memory_space<vmem>>, vector<1x2x64xf32>
    %52 = vector.shape_cast %51 : vector<1x2x64xf32> to vector<2x64xf32>
    %53 = vector.shape_cast %50 : vector<2x64xf32> to vector<1x2x64xf32>
    tpu.vector_store %arg4[%c0_21, %c0_22, %c0_23], %53 {strides = array<i32>} : memref<8x2x64xf32, #tpu.memory_space<vmem>>, vector<1x2x64xf32>,
    %c7_24 = arith.constant 7 : index
    %c0_25 = arith.constant 0 : index
    %c0_26 = arith.constant 0 : index
    %54 = vector.load %arg5[%c7_24, %c0_25, %c0_26] : memref<8x2x64xf32, #tpu.memory_space<vmem>>, vector<1x2x64xf32>
    %55 = vector.shape_cast %54 : vector<1x2x64xf32> to vector<2x64xf32>
    %56 = vector.shape_cast %50 : vector<2x64xf32> to vector<1x2x64xf32>
    tpu.vector_store %arg5[%c7_24, %c0_25, %c0_26], %56 {strides = array<i32>} : memref<8x2x64xf32, #tpu.memory_space<vmem>>, vector<1x2x64xf32>,
    %c0_27 = arith.constant 0 : index
    %c0_28 = arith.constant 0 : index
    %57 = vector.load %arg2[%c0_27, %c0_28] : memref<200x256xf32, #tpu.memory_space<vmem>>, vector<64x256xf32>
    %c64_29 = arith.constant 64 : index
    %c0_30 = arith.constant 0 : index
    %58 = vector.load %arg2[%c64_29, %c0_30] : memref<200x256xf32, #tpu.memory_space<vmem>>, vector<64x256xf32>
    %c1 = arith.constant 1 : index
    %c0_31 = arith.constant 0 : index
    %c0_32 = arith.constant 0 : index
    %59 = vector.load %arg0[%c1, %c0_31, %c0_32] : memref<8x2x32xf32, #tpu.memory_space<vmem>>, vector<1x2x32xf32>
    %60 = vector.shape_cast %59 : vector<1x2x32xf32> to vector<2x32xf32>
    %c6 = arith.constant 6 : index
    %c0_33 = arith.constant 0 : index
    %c0_34 = arith.constant 0 : index
    %61 = vector.load %arg0[%c6, %c0_33, %c0_34] : memref<8x2x32xf32, #tpu.memory_space<vmem>>, vector<1x2x32xf32>
    %62 = vector.shape_cast %61 : vector<1x2x32xf32> to vector<2x32xf32>
    %63 = tpu.concatenate %60, %62 in 1 : vector<2x32xf32>, vector<2x32xf32> -> vector<2x64xf32>
    %cst_35 = arith.constant dense<0.000000e+00> : vector<2x64xf32>
    %64 = tpu.matmul %50, %0, %cst_35 {dimension_numbers = #tpu.dot_dimension_numbers<[1], [0], [0], [1], [0, 0, 1, 1], [], []>} : vector<2x64xf32>, vector<64x64xf32>, vector<2x64xf32> -> vector<2x64xf32>
    %65 = arith.negf %64 : vector<2x64xf32>
    %66 = math.exp %65 : vector<2x64xf32>
    %cst_36 = arith.constant 1.000000e+00 : f32
    %67 = vector.broadcast %cst_36 : f32 to vector<2x64xf32>
    %68 = arith.addf %67, %66 : vector<2x64xf32>
    %69 = arith.divf %67, %68 : vector<2x64xf32>
    %cst_37 = arith.constant 2.000000e+00 : f32
    %70 = vector.broadcast %cst_37 : f32 to vector<2x64xf32>
    %71 = arith.mulf %70, %69 : vector<2x64xf32>
    %72 = arith.mulf %71, %63 : vector<2x64xf32>
    %cst_38 = arith.constant dense<0.000000e+00> : vector<2x64xf32>
    %73 = tpu.matmul %72, %1, %cst_38 {dimension_numbers = #tpu.dot_dimension_numbers<[1], [0], [0], [1], [0, 0, 1, 1], [], []>} : vector<2x64xf32>, vector<64x64xf32>, vector<2x64xf32> -> vector<2x64xf32>
    %74 = arith.negf %73 : vector<2x64xf32>
    %75 = math.exp %74 : vector<2x64xf32>
    %cst_39 = arith.constant 1.000000e+00 : f32
    %76 = vector.broadcast %cst_39 : f32 to vector<2x64xf32>
    %77 = arith.addf %76, %75 : vector<2x64xf32>
    %78 = arith.divf %76, %77 : vector<2x64xf32>
    %cst_40 = arith.constant 2.000000e+00 : f32
    %79 = vector.broadcast %cst_40 : f32 to vector<2x64xf32>
    %80 = arith.mulf %79, %78 : vector<2x64xf32>
    %81 = arith.mulf %80, %50 : vector<2x64xf32>
    %cst_41 = arith.constant dense<0.000000e+00> : vector<2x256xf32>
    %82 = tpu.matmul %72, %57, %cst_41 {dimension_numbers = #tpu.dot_dimension_numbers<[1], [0], [0], [1], [0, 0, 1, 1], [], []>} : vector<2x64xf32>, vector<64x256xf32>, vector<2x256xf32> -> vector<2x256xf32>
    %cst_42 = arith.constant dense<0.000000e+00> : vector<2x256xf32>
    %83 = tpu.matmul %81, %58, %cst_42 {dimension_numbers = #tpu.dot_dimension_numbers<[1], [0], [0], [1], [0, 0, 1, 1], [], []>} : vector<2x64xf32>, vector<64x256xf32>, vector<2x256xf32> -> vector<2x256xf32>
    %84 = arith.addf %82, %83 : vector<2x256xf32>
    %85 = arith.addf %84, %4 : vector<2x256xf32>
    %86 = arith.negf %85 : vector<2x256xf32>
    %87 = math.exp %86 : vector<2x256xf32>
    %cst_43 = arith.constant 1.000000e+00 : f32
    %88 = vector.broadcast %cst_43 : f32 to vector<2x256xf32>
    %89 = arith.addf %88, %87 : vector<2x256xf32>
    %90 = arith.divf %88, %89 : vector<2x256xf32>
    %91 = vector.extract_strided_slice %90 {offsets = [0, 0], sizes = [2, 64], strides = [1, 1]} : vector<2x256xf32> to vector<2x64xf32>
    %92 = vector.extract_strided_slice %90 {offsets = [0, 64], sizes = [2, 64], strides = [1, 1]} : vector<2x256xf32> to vector<2x64xf32>
    %93 = vector.extract_strided_slice %85 {offsets = [0, 128], sizes = [2, 64], strides = [1, 1]} : vector<2x256xf32> to vector<2x64xf32>
    %94 = math.tanh %93 : vector<2x64xf32>
    %95 = vector.extract_strided_slice %90 {offsets = [0, 192], sizes = [2, 64], strides = [1, 1]} : vector<2x256xf32> to vector<2x64xf32>
    %96 = arith.mulf %92, %48 : vector<2x64xf32>
    %97 = arith.mulf %91, %94 : vector<2x64xf32>
    %98 = arith.addf %96, %97 : vector<2x64xf32>
    %99 = math.tanh %98 : vector<2x64xf32>
    %100 = arith.mulf %95, %99 : vector<2x64xf32>
    %c1_44 = arith.constant 1 : index
    %c0_45 = arith.constant 0 : index
    %c0_46 = arith.constant 0 : index
    %101 = vector.load %arg4[%c1_44, %c0_45, %c0_46] : memref<8x2x64xf32, #tpu.memory_space<vmem>>, vector<1x2x64xf32>
    %102 = vector.shape_cast %101 : vector<1x2x64xf32> to vector<2x64xf32>
    %103 = vector.shape_cast %100 : vector<2x64xf32> to vector<1x2x64xf32>
    tpu.vector_store %arg4[%c1_44, %c0_45, %c0_46], %103 {strides = array<i32>} : memref<8x2x64xf32, #tpu.memory_space<vmem>>, vector<1x2x64xf32>,
    %c6_47 = arith.constant 6 : index
    %c0_48 = arith.constant 0 : index
    %c0_49 = arith.constant 0 : index
    %104 = vector.load %arg5[%c6_47, %c0_48, %c0_49] : memref<8x2x64xf32, #tpu.memory_space<vmem>>, vector<1x2x64xf32>
    %105 = vector.shape_cast %104 : vector<1x2x64xf32> to vector<2x64xf32>
    %106 = vector.shape_cast %100 : vector<2x64xf32> to vector<1x2x64xf32>
    tpu.vector_store %arg5[%c6_47, %c0_48, %c0_49], %106 {strides = array<i32>} : memref<8x2x64xf32, #tpu.memory_space<vmem>>, vector<1x2x64xf32>,
    %c0_50 = arith.constant 0 : index
    %c0_51 = arith.constant 0 : index
    %107 = vector.load %arg2[%c0_50, %c0_51] : memref<200x256xf32, #tpu.memory_space<vmem>>, vector<64x256xf32>
    %c64_52 = arith.constant 64 : index
    %c0_53 = arith.constant 0 : index
    %108 = vector.load %arg2[%c64_52, %c0_53] : memref<200x256xf32, #tpu.memory_space<vmem>>, vector<64x256xf32>
    %c2 = arith.constant 2 : index
    %c0_54 = arith.constant 0 : index
    %c0_55 = arith.constant 0 : index
    %109 = vector.load %arg0[%c2, %c0_54, %c0_55] : memref<8x2x32xf32, #tpu.memory_space<vmem>>, vector<1x2x32xf32>
    %110 = vector.shape_cast %109 : vector<1x2x32xf32> to vector<2x32xf32>
    %c5 = arith.constant 5 : index
    %c0_56 = arith.constant 0 : index
    %c0_57 = arith.constant 0 : index
    %111 = vector.load %arg0[%c5, %c0_56, %c0_57] : memref<8x2x32xf32, #tpu.memory_space<vmem>>, vector<1x2x32xf32>
    %112 = vector.shape_cast %111 : vector<1x2x32xf32> to vector<2x32xf32>
    %113 = tpu.concatenate %110, %112 in 1 : vector<2x32xf32>, vector<2x32xf32> -> vector<2x64xf32>
    %cst_58 = arith.constant dense<0.000000e+00> : vector<2x64xf32>
    %114 = tpu.matmul %100, %0, %cst_58 {dimension_numbers = #tpu.dot_dimension_numbers<[1], [0], [0], [1], [0, 0, 1, 1], [], []>} : vector<2x64xf32>, vector<64x64xf32>, vector<2x64xf32> -> vector<2x64xf32>
    %115 = arith.negf %114 : vector<2x64xf32>
    %116 = math.exp %115 : vector<2x64xf32>
    %cst_59 = arith.constant 1.000000e+00 : f32
    %117 = vector.broadcast %cst_59 : f32 to vector<2x64xf32>
    %118 = arith.addf %117, %116 : vector<2x64xf32>
    %119 = arith.divf %117, %118 : vector<2x64xf32>
    %cst_60 = arith.constant 2.000000e+00 : f32
    %120 = vector.broadcast %cst_60 : f32 to vector<2x64xf32>
    %121 = arith.mulf %120, %119 : vector<2x64xf32>
    %122 = arith.mulf %121, %113 : vector<2x64xf32>
    %cst_61 = arith.constant dense<0.000000e+00> : vector<2x64xf32>
    %123 = tpu.matmul %122, %1, %cst_61 {dimension_numbers = #tpu.dot_dimension_numbers<[1], [0], [0], [1], [0, 0, 1, 1], [], []>} : vector<2x64xf32>, vector<64x64xf32>, vector<2x64xf32> -> vector<2x64xf32>
    %124 = arith.negf %123 : vector<2x64xf32>
    %125 = math.exp %124 : vector<2x64xf32>
    %cst_62 = arith.constant 1.000000e+00 : f32
    %126 = vector.broadcast %cst_62 : f32 to vector<2x64xf32>
    %127 = arith.addf %126, %125 : vector<2x64xf32>
    %128 = arith.divf %126, %127 : vector<2x64xf32>
    %cst_63 = arith.constant 2.000000e+00 : f32
    %129 = vector.broadcast %cst_63 : f32 to vector<2x64xf32>
    %130 = arith.mulf %129, %128 : vector<2x64xf32>
    %131 = arith.mulf %130, %100 : vector<2x64xf32>
    %cst_64 = arith.constant dense<0.000000e+00> : vector<2x256xf32>
    %132 = tpu.matmul %122, %107, %cst_64 {dimension_numbers = #tpu.dot_dimension_numbers<[1], [0], [0], [1], [0, 0, 1, 1], [], []>} : vector<2x64xf32>, vector<64x256xf32>, vector<2x256xf32> -> vector<2x256xf32>
    %cst_65 = arith.constant dense<0.000000e+00> : vector<2x256xf32>
    %133 = tpu.matmul %131, %108, %cst_65 {dimension_numbers = #tpu.dot_dimension_numbers<[1], [0], [0], [1], [0, 0, 1, 1], [], []>} : vector<2x64xf32>, vector<64x256xf32>, vector<2x256xf32> -> vector<2x256xf32>
    %134 = arith.addf %132, %133 : vector<2x256xf32>
    %135 = arith.addf %134, %4 : vector<2x256xf32>
    %136 = arith.negf %135 : vector<2x256xf32>
    %137 = math.exp %136 : vector<2x256xf32>
    %cst_66 = arith.constant 1.000000e+00 : f32
    %138 = vector.broadcast %cst_66 : f32 to vector<2x256xf32>
    %139 = arith.addf %138, %137 : vector<2x256xf32>
    %140 = arith.divf %138, %139 : vector<2x256xf32>
    %141 = vector.extract_strided_slice %140 {offsets = [0, 0], sizes = [2, 64], strides = [1, 1]} : vector<2x256xf32> to vector<2x64xf32>
    %142 = vector.extract_strided_slice %140 {offsets = [0, 64], sizes = [2, 64], strides = [1, 1]} : vector<2x256xf32> to vector<2x64xf32>
    %143 = vector.extract_strided_slice %135 {offsets = [0, 128], sizes = [2, 64], strides = [1, 1]} : vector<2x256xf32> to vector<2x64xf32>
    %144 = math.tanh %143 : vector<2x64xf32>
    %145 = vector.extract_strided_slice %140 {offsets = [0, 192], sizes = [2, 64], strides = [1, 1]} : vector<2x256xf32> to vector<2x64xf32>
    %146 = arith.mulf %142, %98 : vector<2x64xf32>
    %147 = arith.mulf %141, %144 : vector<2x64xf32>
    %148 = arith.addf %146, %147 : vector<2x64xf32>
    %149 = math.tanh %148 : vector<2x64xf32>
    %150 = arith.mulf %145, %149 : vector<2x64xf32>
    %c2_67 = arith.constant 2 : index
    %c0_68 = arith.constant 0 : index
    %c0_69 = arith.constant 0 : index
    %151 = vector.load %arg4[%c2_67, %c0_68, %c0_69] : memref<8x2x64xf32, #tpu.memory_space<vmem>>, vector<1x2x64xf32>
    %152 = vector.shape_cast %151 : vector<1x2x64xf32> to vector<2x64xf32>
    %153 = vector.shape_cast %150 : vector<2x64xf32> to vector<1x2x64xf32>
    tpu.vector_store %arg4[%c2_67, %c0_68, %c0_69], %153 {strides = array<i32>} : memref<8x2x64xf32, #tpu.memory_space<vmem>>, vector<1x2x64xf32>,
    %c5_70 = arith.constant 5 : index
    %c0_71 = arith.constant 0 : index
    %c0_72 = arith.constant 0 : index
    %154 = vector.load %arg5[%c5_70, %c0_71, %c0_72] : memref<8x2x64xf32, #tpu.memory_space<vmem>>, vector<1x2x64xf32>
    %155 = vector.shape_cast %154 : vector<1x2x64xf32> to vector<2x64xf32>
    %156 = vector.shape_cast %150 : vector<2x64xf32> to vector<1x2x64xf32>
    tpu.vector_store %arg5[%c5_70, %c0_71, %c0_72], %156 {strides = array<i32>} : memref<8x2x64xf32, #tpu.memory_space<vmem>>, vector<1x2x64xf32>,
    %c0_73 = arith.constant 0 : index
    %c0_74 = arith.constant 0 : index
    %157 = vector.load %arg2[%c0_73, %c0_74] : memref<200x256xf32, #tpu.memory_space<vmem>>, vector<64x256xf32>
    %c64_75 = arith.constant 64 : index
    %c0_76 = arith.constant 0 : index
    %158 = vector.load %arg2[%c64_75, %c0_76] : memref<200x256xf32, #tpu.memory_space<vmem>>, vector<64x256xf32>
    %c3 = arith.constant 3 : index
    %c0_77 = arith.constant 0 : index
    %c0_78 = arith.constant 0 : index
    %159 = vector.load %arg0[%c3, %c0_77, %c0_78] : memref<8x2x32xf32, #tpu.memory_space<vmem>>, vector<1x2x32xf32>
    %160 = vector.shape_cast %159 : vector<1x2x32xf32> to vector<2x32xf32>
    %c4 = arith.constant 4 : index
    %c0_79 = arith.constant 0 : index
    %c0_80 = arith.constant 0 : index
    %161 = vector.load %arg0[%c4, %c0_79, %c0_80] : memref<8x2x32xf32, #tpu.memory_space<vmem>>, vector<1x2x32xf32>
    %162 = vector.shape_cast %161 : vector<1x2x32xf32> to vector<2x32xf32>
    %163 = tpu.concatenate %160, %162 in 1 : vector<2x32xf32>, vector<2x32xf32> -> vector<2x64xf32>
    %cst_81 = arith.constant dense<0.000000e+00> : vector<2x64xf32>
    %164 = tpu.matmul %150, %0, %cst_81 {dimension_numbers = #tpu.dot_dimension_numbers<[1], [0], [0], [1], [0, 0, 1, 1], [], []>} : vector<2x64xf32>, vector<64x64xf32>, vector<2x64xf32> -> vector<2x64xf32>
    %165 = arith.negf %164 : vector<2x64xf32>
    %166 = math.exp %165 : vector<2x64xf32>
    %cst_82 = arith.constant 1.000000e+00 : f32
    %167 = vector.broadcast %cst_82 : f32 to vector<2x64xf32>
    %168 = arith.addf %167, %166 : vector<2x64xf32>
    %169 = arith.divf %167, %168 : vector<2x64xf32>
    %cst_83 = arith.constant 2.000000e+00 : f32
    %170 = vector.broadcast %cst_83 : f32 to vector<2x64xf32>
    %171 = arith.mulf %170, %169 : vector<2x64xf32>
    %172 = arith.mulf %171, %163 : vector<2x64xf32>
    %cst_84 = arith.constant dense<0.000000e+00> : vector<2x64xf32>
    %173 = tpu.matmul %172, %1, %cst_84 {dimension_numbers = #tpu.dot_dimension_numbers<[1], [0], [0], [1], [0, 0, 1, 1], [], []>} : vector<2x64xf32>, vector<64x64xf32>, vector<2x64xf32> -> vector<2x64xf32>
    %174 = arith.negf %173 : vector<2x64xf32>
    %175 = math.exp %174 : vector<2x64xf32>
    %cst_85 = arith.constant 1.000000e+00 : f32
    %176 = vector.broadcast %cst_85 : f32 to vector<2x64xf32>
    %177 = arith.addf %176, %175 : vector<2x64xf32>
    %178 = arith.divf %176, %177 : vector<2x64xf32>
    %cst_86 = arith.constant 2.000000e+00 : f32
    %179 = vector.broadcast %cst_86 : f32 to vector<2x64xf32>
    %180 = arith.mulf %179, %178 : vector<2x64xf32>
    %181 = arith.mulf %180, %150 : vector<2x64xf32>
    %cst_87 = arith.constant dense<0.000000e+00> : vector<2x256xf32>
    %182 = tpu.matmul %172, %157, %cst_87 {dimension_numbers = #tpu.dot_dimension_numbers<[1], [0], [0], [1], [0, 0, 1, 1], [], []>} : vector<2x64xf32>, vector<64x256xf32>, vector<2x256xf32> -> vector<2x256xf32>
    %cst_88 = arith.constant dense<0.000000e+00> : vector<2x256xf32>
    %183 = tpu.matmul %181, %158, %cst_88 {dimension_numbers = #tpu.dot_dimension_numbers<[1], [0], [0], [1], [0, 0, 1, 1], [], []>} : vector<2x64xf32>, vector<64x256xf32>, vector<2x256xf32> -> vector<2x256xf32>
    %184 = arith.addf %182, %183 : vector<2x256xf32>
    %185 = arith.addf %184, %4 : vector<2x256xf32>
    %186 = arith.negf %185 : vector<2x256xf32>
    %187 = math.exp %186 : vector<2x256xf32>
    %cst_89 = arith.constant 1.000000e+00 : f32
    %188 = vector.broadcast %cst_89 : f32 to vector<2x256xf32>
    %189 = arith.addf %188, %187 : vector<2x256xf32>
    %190 = arith.divf %188, %189 : vector<2x256xf32>
    %191 = vector.extract_strided_slice %190 {offsets = [0, 0], sizes = [2, 64], strides = [1, 1]} : vector<2x256xf32> to vector<2x64xf32>
    %192 = vector.extract_strided_slice %190 {offsets = [0, 64], sizes = [2, 64], strides = [1, 1]} : vector<2x256xf32> to vector<2x64xf32>
    %193 = vector.extract_strided_slice %185 {offsets = [0, 128], sizes = [2, 64], strides = [1, 1]} : vector<2x256xf32> to vector<2x64xf32>
    %194 = math.tanh %193 : vector<2x64xf32>
    %195 = vector.extract_strided_slice %190 {offsets = [0, 192], sizes = [2, 64], strides = [1, 1]} : vector<2x256xf32> to vector<2x64xf32>
    %196 = arith.mulf %192, %148 : vector<2x64xf32>
    %197 = arith.mulf %191, %194 : vector<2x64xf32>
    %198 = arith.addf %196, %197 : vector<2x64xf32>
    %199 = math.tanh %198 : vector<2x64xf32>
    %200 = arith.mulf %195, %199 : vector<2x64xf32>
    %c3_90 = arith.constant 3 : index
    %c0_91 = arith.constant 0 : index
    %c0_92 = arith.constant 0 : index
    %201 = vector.load %arg4[%c3_90, %c0_91, %c0_92] : memref<8x2x64xf32, #tpu.memory_space<vmem>>, vector<1x2x64xf32>
    %202 = vector.shape_cast %201 : vector<1x2x64xf32> to vector<2x64xf32>
    %203 = vector.shape_cast %200 : vector<2x64xf32> to vector<1x2x64xf32>
    tpu.vector_store %arg4[%c3_90, %c0_91, %c0_92], %203 {strides = array<i32>} : memref<8x2x64xf32, #tpu.memory_space<vmem>>, vector<1x2x64xf32>,
    %c4_93 = arith.constant 4 : index
    %c0_94 = arith.constant 0 : index
    %c0_95 = arith.constant 0 : index
    %204 = vector.load %arg5[%c4_93, %c0_94, %c0_95] : memref<8x2x64xf32, #tpu.memory_space<vmem>>, vector<1x2x64xf32>
    %205 = vector.shape_cast %204 : vector<1x2x64xf32> to vector<2x64xf32>
    %206 = vector.shape_cast %200 : vector<2x64xf32> to vector<1x2x64xf32>
    tpu.vector_store %arg5[%c4_93, %c0_94, %c0_95], %206 {strides = array<i32>} : memref<8x2x64xf32, #tpu.memory_space<vmem>>, vector<1x2x64xf32>,
    %c0_96 = arith.constant 0 : index
    %c0_97 = arith.constant 0 : index
    %207 = vector.load %arg2[%c0_96, %c0_97] : memref<200x256xf32, #tpu.memory_space<vmem>>, vector<64x256xf32>
    %c64_98 = arith.constant 64 : index
    %c0_99 = arith.constant 0 : index
    %208 = vector.load %arg2[%c64_98, %c0_99] : memref<200x256xf32, #tpu.memory_space<vmem>>, vector<64x256xf32>
    %c4_100 = arith.constant 4 : index
    %c0_101 = arith.constant 0 : index
    %c0_102 = arith.constant 0 : index
    %209 = vector.load %arg0[%c4_100, %c0_101, %c0_102] : memref<8x2x32xf32, #tpu.memory_space<vmem>>, vector<1x2x32xf32>
    %210 = vector.shape_cast %209 : vector<1x2x32xf32> to vector<2x32xf32>
    %c3_103 = arith.constant 3 : index
    %c0_104 = arith.constant 0 : index
    %c0_105 = arith.constant 0 : index
    %211 = vector.load %arg0[%c3_103, %c0_104, %c0_105] : memref<8x2x32xf32, #tpu.memory_space<vmem>>, vector<1x2x32xf32>
    %212 = vector.shape_cast %211 : vector<1x2x32xf32> to vector<2x32xf32>
    %213 = tpu.concatenate %210, %212 in 1 : vector<2x32xf32>, vector<2x32xf32> -> vector<2x64xf32>
    %cst_106 = arith.constant dense<0.000000e+00> : vector<2x64xf32>
    %214 = tpu.matmul %200, %0, %cst_106 {dimension_numbers = #tpu.dot_dimension_numbers<[1], [0], [0], [1], [0, 0, 1, 1], [], []>} : vector<2x64xf32>, vector<64x64xf32>, vector<2x64xf32> -> vector<2x64xf32>
    %215 = arith.negf %214 : vector<2x64xf32>
    %216 = math.exp %215 : vector<2x64xf32>
    %cst_107 = arith.constant 1.000000e+00 : f32
    %217 = vector.broadcast %cst_107 : f32 to vector<2x64xf32>
    %218 = arith.addf %217, %216 : vector<2x64xf32>
    %219 = arith.divf %217, %218 : vector<2x64xf32>
    %cst_108 = arith.constant 2.000000e+00 : f32
    %220 = vector.broadcast %cst_108 : f32 to vector<2x64xf32>
    %221 = arith.mulf %220, %219 : vector<2x64xf32>
    %222 = arith.mulf %221, %213 : vector<2x64xf32>
    %cst_109 = arith.constant dense<0.000000e+00> : vector<2x64xf32>
    %223 = tpu.matmul %222, %1, %cst_109 {dimension_numbers = #tpu.dot_dimension_numbers<[1], [0], [0], [1], [0, 0, 1, 1], [], []>} : vector<2x64xf32>, vector<64x64xf32>, vector<2x64xf32> -> vector<2x64xf32>
    %224 = arith.negf %223 : vector<2x64xf32>
    %225 = math.exp %224 : vector<2x64xf32>
    %cst_110 = arith.constant 1.000000e+00 : f32
    %226 = vector.broadcast %cst_110 : f32 to vector<2x64xf32>
    %227 = arith.addf %226, %225 : vector<2x64xf32>
    %228 = arith.divf %226, %227 : vector<2x64xf32>
    %cst_111 = arith.constant 2.000000e+00 : f32
    %229 = vector.broadcast %cst_111 : f32 to vector<2x64xf32>
    %230 = arith.mulf %229, %228 : vector<2x64xf32>
    %231 = arith.mulf %230, %200 : vector<2x64xf32>
    %cst_112 = arith.constant dense<0.000000e+00> : vector<2x256xf32>
    %232 = tpu.matmul %222, %207, %cst_112 {dimension_numbers = #tpu.dot_dimension_numbers<[1], [0], [0], [1], [0, 0, 1, 1], [], []>} : vector<2x64xf32>, vector<64x256xf32>, vector<2x256xf32> -> vector<2x256xf32>
    %cst_113 = arith.constant dense<0.000000e+00> : vector<2x256xf32>
    %233 = tpu.matmul %231, %208, %cst_113 {dimension_numbers = #tpu.dot_dimension_numbers<[1], [0], [0], [1], [0, 0, 1, 1], [], []>} : vector<2x64xf32>, vector<64x256xf32>, vector<2x256xf32> -> vector<2x256xf32>
    %234 = arith.addf %232, %233 : vector<2x256xf32>
    %235 = arith.addf %234, %4 : vector<2x256xf32>
    %236 = arith.negf %235 : vector<2x256xf32>
    %237 = math.exp %236 : vector<2x256xf32>
    %cst_114 = arith.constant 1.000000e+00 : f32
    %238 = vector.broadcast %cst_114 : f32 to vector<2x256xf32>
    %239 = arith.addf %238, %237 : vector<2x256xf32>
    %240 = arith.divf %238, %239 : vector<2x256xf32>
    %241 = vector.extract_strided_slice %240 {offsets = [0, 0], sizes = [2, 64], strides = [1, 1]} : vector<2x256xf32> to vector<2x64xf32>
    %242 = vector.extract_strided_slice %240 {offsets = [0, 64], sizes = [2, 64], strides = [1, 1]} : vector<2x256xf32> to vector<2x64xf32>
    %243 = vector.extract_strided_slice %235 {offsets = [0, 128], sizes = [2, 64], strides = [1, 1]} : vector<2x256xf32> to vector<2x64xf32>
    %244 = math.tanh %243 : vector<2x64xf32>
    %245 = vector.extract_strided_slice %240 {offsets = [0, 192], sizes = [2, 64], strides = [1, 1]} : vector<2x256xf32> to vector<2x64xf32>
    %246 = arith.mulf %242, %198 : vector<2x64xf32>
    %247 = arith.mulf %241, %244 : vector<2x64xf32>
    %248 = arith.addf %246, %247 : vector<2x64xf32>
    %249 = math.tanh %248 : vector<2x64xf32>
    %250 = arith.mulf %245, %249 : vector<2x64xf32>
    %c4_115 = arith.constant 4 : index
    %c0_116 = arith.constant 0 : index
    %c0_117 = arith.constant 0 : index
    %251 = vector.load %arg4[%c4_115, %c0_116, %c0_117] : memref<8x2x64xf32, #tpu.memory_space<vmem>>, vector<1x2x64xf32>
    %252 = vector.shape_cast %251 : vector<1x2x64xf32> to vector<2x64xf32>
    %253 = vector.shape_cast %250 : vector<2x64xf32> to vector<1x2x64xf32>
    tpu.vector_store %arg4[%c4_115, %c0_116, %c0_117], %253 {strides = array<i32>} : memref<8x2x64xf32, #tpu.memory_space<vmem>>, vector<1x2x64xf32>,
    %c3_118 = arith.constant 3 : index
    %c0_119 = arith.constant 0 : index
    %c0_120 = arith.constant 0 : index
    %254 = vector.load %arg5[%c3_118, %c0_119, %c0_120] : memref<8x2x64xf32, #tpu.memory_space<vmem>>, vector<1x2x64xf32>
    %255 = vector.shape_cast %254 : vector<1x2x64xf32> to vector<2x64xf32>
    %256 = vector.shape_cast %250 : vector<2x64xf32> to vector<1x2x64xf32>
    tpu.vector_store %arg5[%c3_118, %c0_119, %c0_120], %256 {strides = array<i32>} : memref<8x2x64xf32, #tpu.memory_space<vmem>>, vector<1x2x64xf32>,
    %c0_121 = arith.constant 0 : index
    %c0_122 = arith.constant 0 : index
    %257 = vector.load %arg2[%c0_121, %c0_122] : memref<200x256xf32, #tpu.memory_space<vmem>>, vector<64x256xf32>
    %c64_123 = arith.constant 64 : index
    %c0_124 = arith.constant 0 : index
    %258 = vector.load %arg2[%c64_123, %c0_124] : memref<200x256xf32, #tpu.memory_space<vmem>>, vector<64x256xf32>
    %c5_125 = arith.constant 5 : index
    %c0_126 = arith.constant 0 : index
    %c0_127 = arith.constant 0 : index
    %259 = vector.load %arg0[%c5_125, %c0_126, %c0_127] : memref<8x2x32xf32, #tpu.memory_space<vmem>>, vector<1x2x32xf32>
    %260 = vector.shape_cast %259 : vector<1x2x32xf32> to vector<2x32xf32>
    %c2_128 = arith.constant 2 : index
    %c0_129 = arith.constant 0 : index
    %c0_130 = arith.constant 0 : index
    %261 = vector.load %arg0[%c2_128, %c0_129, %c0_130] : memref<8x2x32xf32, #tpu.memory_space<vmem>>, vector<1x2x32xf32>
    %262 = vector.shape_cast %261 : vector<1x2x32xf32> to vector<2x32xf32>
    %263 = tpu.concatenate %260, %262 in 1 : vector<2x32xf32>, vector<2x32xf32> -> vector<2x64xf32>
    %cst_131 = arith.constant dense<0.000000e+00> : vector<2x64xf32>
    %264 = tpu.matmul %250, %0, %cst_131 {dimension_numbers = #tpu.dot_dimension_numbers<[1], [0], [0], [1], [0, 0, 1, 1], [], []>} : vector<2x64xf32>, vector<64x64xf32>, vector<2x64xf32> -> vector<2x64xf32>
    %265 = arith.negf %264 : vector<2x64xf32>
    %266 = math.exp %265 : vector<2x64xf32>
    %cst_132 = arith.constant 1.000000e+00 : f32
    %267 = vector.broadcast %cst_132 : f32 to vector<2x64xf32>
    %268 = arith.addf %267, %266 : vector<2x64xf32>
    %269 = arith.divf %267, %268 : vector<2x64xf32>
    %cst_133 = arith.constant 2.000000e+00 : f32
    %270 = vector.broadcast %cst_133 : f32 to vector<2x64xf32>
    %271 = arith.mulf %270, %269 : vector<2x64xf32>
    %272 = arith.mulf %271, %263 : vector<2x64xf32>
    %cst_134 = arith.constant dense<0.000000e+00> : vector<2x64xf32>
    %273 = tpu.matmul %272, %1, %cst_134 {dimension_numbers = #tpu.dot_dimension_numbers<[1], [0], [0], [1], [0, 0, 1, 1], [], []>} : vector<2x64xf32>, vector<64x64xf32>, vector<2x64xf32> -> vector<2x64xf32>
    %274 = arith.negf %273 : vector<2x64xf32>
    %275 = math.exp %274 : vector<2x64xf32>
    %cst_135 = arith.constant 1.000000e+00 : f32
    %276 = vector.broadcast %cst_135 : f32 to vector<2x64xf32>
    %277 = arith.addf %276, %275 : vector<2x64xf32>
    %278 = arith.divf %276, %277 : vector<2x64xf32>
    %cst_136 = arith.constant 2.000000e+00 : f32
    %279 = vector.broadcast %cst_136 : f32 to vector<2x64xf32>
    %280 = arith.mulf %279, %278 : vector<2x64xf32>
    %281 = arith.mulf %280, %250 : vector<2x64xf32>
    %cst_137 = arith.constant dense<0.000000e+00> : vector<2x256xf32>
    %282 = tpu.matmul %272, %257, %cst_137 {dimension_numbers = #tpu.dot_dimension_numbers<[1], [0], [0], [1], [0, 0, 1, 1], [], []>} : vector<2x64xf32>, vector<64x256xf32>, vector<2x256xf32> -> vector<2x256xf32>
    %cst_138 = arith.constant dense<0.000000e+00> : vector<2x256xf32>
    %283 = tpu.matmul %281, %258, %cst_138 {dimension_numbers = #tpu.dot_dimension_numbers<[1], [0], [0], [1], [0, 0, 1, 1], [], []>} : vector<2x64xf32>, vector<64x256xf32>, vector<2x256xf32> -> vector<2x256xf32>
    %284 = arith.addf %282, %283 : vector<2x256xf32>
    %285 = arith.addf %284, %4 : vector<2x256xf32>
    %286 = arith.negf %285 : vector<2x256xf32>
    %287 = math.exp %286 : vector<2x256xf32>
    %cst_139 = arith.constant 1.000000e+00 : f32
    %288 = vector.broadcast %cst_139 : f32 to vector<2x256xf32>
    %289 = arith.addf %288, %287 : vector<2x256xf32>
    %290 = arith.divf %288, %289 : vector<2x256xf32>
    %291 = vector.extract_strided_slice %290 {offsets = [0, 0], sizes = [2, 64], strides = [1, 1]} : vector<2x256xf32> to vector<2x64xf32>
    %292 = vector.extract_strided_slice %290 {offsets = [0, 64], sizes = [2, 64], strides = [1, 1]} : vector<2x256xf32> to vector<2x64xf32>
    %293 = vector.extract_strided_slice %285 {offsets = [0, 128], sizes = [2, 64], strides = [1, 1]} : vector<2x256xf32> to vector<2x64xf32>
    %294 = math.tanh %293 : vector<2x64xf32>
    %295 = vector.extract_strided_slice %290 {offsets = [0, 192], sizes = [2, 64], strides = [1, 1]} : vector<2x256xf32> to vector<2x64xf32>
    %296 = arith.mulf %292, %248 : vector<2x64xf32>
    %297 = arith.mulf %291, %294 : vector<2x64xf32>
    %298 = arith.addf %296, %297 : vector<2x64xf32>
    %299 = math.tanh %298 : vector<2x64xf32>
    %300 = arith.mulf %295, %299 : vector<2x64xf32>
    %c5_140 = arith.constant 5 : index
    %c0_141 = arith.constant 0 : index
    %c0_142 = arith.constant 0 : index
    %301 = vector.load %arg4[%c5_140, %c0_141, %c0_142] : memref<8x2x64xf32, #tpu.memory_space<vmem>>, vector<1x2x64xf32>
    %302 = vector.shape_cast %301 : vector<1x2x64xf32> to vector<2x64xf32>
    %303 = vector.shape_cast %300 : vector<2x64xf32> to vector<1x2x64xf32>
    tpu.vector_store %arg4[%c5_140, %c0_141, %c0_142], %303 {strides = array<i32>} : memref<8x2x64xf32, #tpu.memory_space<vmem>>, vector<1x2x64xf32>,
    %c2_143 = arith.constant 2 : index
    %c0_144 = arith.constant 0 : index
    %c0_145 = arith.constant 0 : index
    %304 = vector.load %arg5[%c2_143, %c0_144, %c0_145] : memref<8x2x64xf32, #tpu.memory_space<vmem>>, vector<1x2x64xf32>
    %305 = vector.shape_cast %304 : vector<1x2x64xf32> to vector<2x64xf32>
    %306 = vector.shape_cast %300 : vector<2x64xf32> to vector<1x2x64xf32>
    tpu.vector_store %arg5[%c2_143, %c0_144, %c0_145], %306 {strides = array<i32>} : memref<8x2x64xf32, #tpu.memory_space<vmem>>, vector<1x2x64xf32>,
    %c0_146 = arith.constant 0 : index
    %c0_147 = arith.constant 0 : index
    %307 = vector.load %arg2[%c0_146, %c0_147] : memref<200x256xf32, #tpu.memory_space<vmem>>, vector<64x256xf32>
    %c64_148 = arith.constant 64 : index
    %c0_149 = arith.constant 0 : index
    %308 = vector.load %arg2[%c64_148, %c0_149] : memref<200x256xf32, #tpu.memory_space<vmem>>, vector<64x256xf32>
    %c6_150 = arith.constant 6 : index
    %c0_151 = arith.constant 0 : index
    %c0_152 = arith.constant 0 : index
    %309 = vector.load %arg0[%c6_150, %c0_151, %c0_152] : memref<8x2x32xf32, #tpu.memory_space<vmem>>, vector<1x2x32xf32>
    %310 = vector.shape_cast %309 : vector<1x2x32xf32> to vector<2x32xf32>
    %c1_153 = arith.constant 1 : index
    %c0_154 = arith.constant 0 : index
    %c0_155 = arith.constant 0 : index
    %311 = vector.load %arg0[%c1_153, %c0_154, %c0_155] : memref<8x2x32xf32, #tpu.memory_space<vmem>>, vector<1x2x32xf32>
    %312 = vector.shape_cast %311 : vector<1x2x32xf32> to vector<2x32xf32>
    %313 = tpu.concatenate %310, %312 in 1 : vector<2x32xf32>, vector<2x32xf32> -> vector<2x64xf32>
    %cst_156 = arith.constant dense<0.000000e+00> : vector<2x64xf32>
    %314 = tpu.matmul %300, %0, %cst_156 {dimension_numbers = #tpu.dot_dimension_numbers<[1], [0], [0], [1], [0, 0, 1, 1], [], []>} : vector<2x64xf32>, vector<64x64xf32>, vector<2x64xf32> -> vector<2x64xf32>
    %315 = arith.negf %314 : vector<2x64xf32>
    %316 = math.exp %315 : vector<2x64xf32>
    %cst_157 = arith.constant 1.000000e+00 : f32
    %317 = vector.broadcast %cst_157 : f32 to vector<2x64xf32>
    %318 = arith.addf %317, %316 : vector<2x64xf32>
    %319 = arith.divf %317, %318 : vector<2x64xf32>
    %cst_158 = arith.constant 2.000000e+00 : f32
    %320 = vector.broadcast %cst_158 : f32 to vector<2x64xf32>
    %321 = arith.mulf %320, %319 : vector<2x64xf32>
    %322 = arith.mulf %321, %313 : vector<2x64xf32>
    %cst_159 = arith.constant dense<0.000000e+00> : vector<2x64xf32>
    %323 = tpu.matmul %322, %1, %cst_159 {dimension_numbers = #tpu.dot_dimension_numbers<[1], [0], [0], [1], [0, 0, 1, 1], [], []>} : vector<2x64xf32>, vector<64x64xf32>, vector<2x64xf32> -> vector<2x64xf32>
    %324 = arith.negf %323 : vector<2x64xf32>
    %325 = math.exp %324 : vector<2x64xf32>
    %cst_160 = arith.constant 1.000000e+00 : f32
    %326 = vector.broadcast %cst_160 : f32 to vector<2x64xf32>
    %327 = arith.addf %326, %325 : vector<2x64xf32>
    %328 = arith.divf %326, %327 : vector<2x64xf32>
    %cst_161 = arith.constant 2.000000e+00 : f32
    %329 = vector.broadcast %cst_161 : f32 to vector<2x64xf32>
    %330 = arith.mulf %329, %328 : vector<2x64xf32>
    %331 = arith.mulf %330, %300 : vector<2x64xf32>
    %cst_162 = arith.constant dense<0.000000e+00> : vector<2x256xf32>
    %332 = tpu.matmul %322, %307, %cst_162 {dimension_numbers = #tpu.dot_dimension_numbers<[1], [0], [0], [1], [0, 0, 1, 1], [], []>} : vector<2x64xf32>, vector<64x256xf32>, vector<2x256xf32> -> vector<2x256xf32>
    %cst_163 = arith.constant dense<0.000000e+00> : vector<2x256xf32>
    %333 = tpu.matmul %331, %308, %cst_163 {dimension_numbers = #tpu.dot_dimension_numbers<[1], [0], [0], [1], [0, 0, 1, 1], [], []>} : vector<2x64xf32>, vector<64x256xf32>, vector<2x256xf32> -> vector<2x256xf32>
    %334 = arith.addf %332, %333 : vector<2x256xf32>
    %335 = arith.addf %334, %4 : vector<2x256xf32>
    %336 = arith.negf %335 : vector<2x256xf32>
    %337 = math.exp %336 : vector<2x256xf32>
    %cst_164 = arith.constant 1.000000e+00 : f32
    %338 = vector.broadcast %cst_164 : f32 to vector<2x256xf32>
    %339 = arith.addf %338, %337 : vector<2x256xf32>
    %340 = arith.divf %338, %339 : vector<2x256xf32>
    %341 = vector.extract_strided_slice %340 {offsets = [0, 0], sizes = [2, 64], strides = [1, 1]} : vector<2x256xf32> to vector<2x64xf32>
    %342 = vector.extract_strided_slice %340 {offsets = [0, 64], sizes = [2, 64], strides = [1, 1]} : vector<2x256xf32> to vector<2x64xf32>
    %343 = vector.extract_strided_slice %335 {offsets = [0, 128], sizes = [2, 64], strides = [1, 1]} : vector<2x256xf32> to vector<2x64xf32>
    %344 = math.tanh %343 : vector<2x64xf32>
    %345 = vector.extract_strided_slice %340 {offsets = [0, 192], sizes = [2, 64], strides = [1, 1]} : vector<2x256xf32> to vector<2x64xf32>
    %346 = arith.mulf %342, %298 : vector<2x64xf32>
    %347 = arith.mulf %341, %344 : vector<2x64xf32>
    %348 = arith.addf %346, %347 : vector<2x64xf32>
    %349 = math.tanh %348 : vector<2x64xf32>
    %350 = arith.mulf %345, %349 : vector<2x64xf32>
    %c6_165 = arith.constant 6 : index
    %c0_166 = arith.constant 0 : index
    %c0_167 = arith.constant 0 : index
    %351 = vector.load %arg4[%c6_165, %c0_166, %c0_167] : memref<8x2x64xf32, #tpu.memory_space<vmem>>, vector<1x2x64xf32>
    %352 = vector.shape_cast %351 : vector<1x2x64xf32> to vector<2x64xf32>
    %353 = vector.shape_cast %350 : vector<2x64xf32> to vector<1x2x64xf32>
    tpu.vector_store %arg4[%c6_165, %c0_166, %c0_167], %353 {strides = array<i32>} : memref<8x2x64xf32, #tpu.memory_space<vmem>>, vector<1x2x64xf32>,
    %c1_168 = arith.constant 1 : index
    %c0_169 = arith.constant 0 : index
    %c0_170 = arith.constant 0 : index
    %354 = vector.load %arg5[%c1_168, %c0_169, %c0_170] : memref<8x2x64xf32, #tpu.memory_space<vmem>>, vector<1x2x64xf32>
    %355 = vector.shape_cast %354 : vector<1x2x64xf32> to vector<2x64xf32>
    %356 = vector.shape_cast %350 : vector<2x64xf32> to vector<1x2x64xf32>
    tpu.vector_store %arg5[%c1_168, %c0_169, %c0_170], %356 {strides = array<i32>} : memref<8x2x64xf32, #tpu.memory_space<vmem>>, vector<1x2x64xf32>,
    %c0_171 = arith.constant 0 : index
    %c0_172 = arith.constant 0 : index
    %357 = vector.load %arg2[%c0_171, %c0_172] : memref<200x256xf32, #tpu.memory_space<vmem>>, vector<64x256xf32>
    %c64_173 = arith.constant 64 : index
    %c0_174 = arith.constant 0 : index
    %358 = vector.load %arg2[%c64_173, %c0_174] : memref<200x256xf32, #tpu.memory_space<vmem>>, vector<64x256xf32>
    %c7_175 = arith.constant 7 : index
    %c0_176 = arith.constant 0 : index
    %c0_177 = arith.constant 0 : index
    %359 = vector.load %arg0[%c7_175, %c0_176, %c0_177] : memref<8x2x32xf32, #tpu.memory_space<vmem>>, vector<1x2x32xf32>
    %360 = vector.shape_cast %359 : vector<1x2x32xf32> to vector<2x32xf32>
    %c0_178 = arith.constant 0 : index
    %c0_179 = arith.constant 0 : index
    %c0_180 = arith.constant 0 : index
    %361 = vector.load %arg0[%c0_178, %c0_179, %c0_180] : memref<8x2x32xf32, #tpu.memory_space<vmem>>, vector<1x2x32xf32>
    %362 = vector.shape_cast %361 : vector<1x2x32xf32> to vector<2x32xf32>
    %363 = tpu.concatenate %360, %362 in 1 : vector<2x32xf32>, vector<2x32xf32> -> vector<2x64xf32>
    %cst_181 = arith.constant dense<0.000000e+00> : vector<2x64xf32>
    %364 = tpu.matmul %350, %0, %cst_181 {dimension_numbers = #tpu.dot_dimension_numbers<[1], [0], [0], [1], [0, 0, 1, 1], [], []>} : vector<2x64xf32>, vector<64x64xf32>, vector<2x64xf32> -> vector<2x64xf32>
    %365 = arith.negf %364 : vector<2x64xf32>
    %366 = math.exp %365 : vector<2x64xf32>
    %cst_182 = arith.constant 1.000000e+00 : f32
    %367 = vector.broadcast %cst_182 : f32 to vector<2x64xf32>
    %368 = arith.addf %367, %366 : vector<2x64xf32>
    %369 = arith.divf %367, %368 : vector<2x64xf32>
    %cst_183 = arith.constant 2.000000e+00 : f32
    %370 = vector.broadcast %cst_183 : f32 to vector<2x64xf32>
    %371 = arith.mulf %370, %369 : vector<2x64xf32>
    %372 = arith.mulf %371, %363 : vector<2x64xf32>
    %cst_184 = arith.constant dense<0.000000e+00> : vector<2x64xf32>
    %373 = tpu.matmul %372, %1, %cst_184 {dimension_numbers = #tpu.dot_dimension_numbers<[1], [0], [0], [1], [0, 0, 1, 1], [], []>} : vector<2x64xf32>, vector<64x64xf32>, vector<2x64xf32> -> vector<2x64xf32>
    %374 = arith.negf %373 : vector<2x64xf32>
    %375 = math.exp %374 : vector<2x64xf32>
    %cst_185 = arith.constant 1.000000e+00 : f32
    %376 = vector.broadcast %cst_185 : f32 to vector<2x64xf32>
    %377 = arith.addf %376, %375 : vector<2x64xf32>
    %378 = arith.divf %376, %377 : vector<2x64xf32>
    %cst_186 = arith.constant 2.000000e+00 : f32
    %379 = vector.broadcast %cst_186 : f32 to vector<2x64xf32>
    %380 = arith.mulf %379, %378 : vector<2x64xf32>
    %381 = arith.mulf %380, %350 : vector<2x64xf32>
    %cst_187 = arith.constant dense<0.000000e+00> : vector<2x256xf32>
    %382 = tpu.matmul %372, %357, %cst_187 {dimension_numbers = #tpu.dot_dimension_numbers<[1], [0], [0], [1], [0, 0, 1, 1], [], []>} : vector<2x64xf32>, vector<64x256xf32>, vector<2x256xf32> -> vector<2x256xf32>
    %cst_188 = arith.constant dense<0.000000e+00> : vector<2x256xf32>
    %383 = tpu.matmul %381, %358, %cst_188 {dimension_numbers = #tpu.dot_dimension_numbers<[1], [0], [0], [1], [0, 0, 1, 1], [], []>} : vector<2x64xf32>, vector<64x256xf32>, vector<2x256xf32> -> vector<2x256xf32>
    %384 = arith.addf %382, %383 : vector<2x256xf32>
    %385 = arith.addf %384, %4 : vector<2x256xf32>
    %386 = arith.negf %385 : vector<2x256xf32>
    %387 = math.exp %386 : vector<2x256xf32>
    %cst_189 = arith.constant 1.000000e+00 : f32
    %388 = vector.broadcast %cst_189 : f32 to vector<2x256xf32>
    %389 = arith.addf %388, %387 : vector<2x256xf32>
    %390 = arith.divf %388, %389 : vector<2x256xf32>
    %391 = vector.extract_strided_slice %390 {offsets = [0, 0], sizes = [2, 64], strides = [1, 1]} : vector<2x256xf32> to vector<2x64xf32>
    %392 = vector.extract_strided_slice %390 {offsets = [0, 64], sizes = [2, 64], strides = [1, 1]} : vector<2x256xf32> to vector<2x64xf32>
    %393 = vector.extract_strided_slice %385 {offsets = [0, 128], sizes = [2, 64], strides = [1, 1]} : vector<2x256xf32> to vector<2x64xf32>
    %394 = math.tanh %393 : vector<2x64xf32>
    %395 = vector.extract_strided_slice %390 {offsets = [0, 192], sizes = [2, 64], strides = [1, 1]} : vector<2x256xf32> to vector<2x64xf32>
    %396 = arith.mulf %392, %348 : vector<2x64xf32>
    %397 = arith.mulf %391, %394 : vector<2x64xf32>
    %398 = arith.addf %396, %397 : vector<2x64xf32>
    %399 = math.tanh %398 : vector<2x64xf32>
    %400 = arith.mulf %395, %399 : vector<2x64xf32>
    %c7_190 = arith.constant 7 : index
    %c0_191 = arith.constant 0 : index
    %c0_192 = arith.constant 0 : index
    %401 = vector.load %arg4[%c7_190, %c0_191, %c0_192] : memref<8x2x64xf32, #tpu.memory_space<vmem>>, vector<1x2x64xf32>
    %402 = vector.shape_cast %401 : vector<1x2x64xf32> to vector<2x64xf32>
    %403 = vector.shape_cast %400 : vector<2x64xf32> to vector<1x2x64xf32>
    tpu.vector_store %arg4[%c7_190, %c0_191, %c0_192], %403 {strides = array<i32>} : memref<8x2x64xf32, #tpu.memory_space<vmem>>, vector<1x2x64xf32>,
    %c0_193 = arith.constant 0 : index
    %c0_194 = arith.constant 0 : index
    %c0_195 = arith.constant 0 : index
    %404 = vector.load %arg5[%c0_193, %c0_194, %c0_195] : memref<8x2x64xf32, #tpu.memory_space<vmem>>, vector<1x2x64xf32>
    %405 = vector.shape_cast %404 : vector<1x2x64xf32> to vector<2x64xf32>
    %406 = vector.shape_cast %400 : vector<2x64xf32> to vector<1x2x64xf32>
    tpu.vector_store %arg5[%c0_193, %c0_194, %c0_195], %406 {strides = array<i32>} : memref<8x2x64xf32, #tpu.memory_space<vmem>>, vector<1x2x64xf32>,
    %c128_196 = arith.constant 128 : index
    %c128_197 = arith.constant 128 : index
    %407 = vector.load %arg2[%c128_196, %c128_197] : memref<200x256xf32, #tpu.memory_space<vmem>>, vector<64x8xf32>
    %c128_198 = arith.constant 128 : index
    %c136 = arith.constant 136 : index
    %408 = vector.load %arg2[%c128_198, %c136] : memref<200x256xf32, #tpu.memory_space<vmem>>, vector<64x8xf32>
    %c193 = arith.constant 193 : index
    %c0_199 = arith.constant 0 : index
    %409 = vector.load %arg2[%c193, %c0_199] : memref<200x256xf32, #tpu.memory_space<vmem>>, vector<1x8xf32>
    %c0_200 = arith.constant 0 : index
    %c0_201 = arith.constant 0 : index
    %c0_202 = arith.constant 0 : index
    %410 = vector.load %arg4[%c0_200, %c0_201, %c0_202] : memref<8x2x64xf32, #tpu.memory_space<vmem>>, vector<8x2x64xf32>
    %cst_203 = arith.constant dense<0.000000e+00> : vector<8x2x8xf32>
    %411 = tpu.matmul %410, %407, %cst_203 {dimension_numbers = #tpu.dot_dimension_numbers<[2], [0], [0, 1], [1], [0, 0, 0, 1, 1, 1], [], []>} : vector<8x2x64xf32>, vector<64x8xf32>, vector<8x2x8xf32> -> vector<8x2x8xf32>
    %c0_204 = arith.constant 0 : index
    %c0_205 = arith.constant 0 : index
    %c0_206 = arith.constant 0 : index
    %412 = vector.load %arg5[%c0_204, %c0_205, %c0_206] : memref<8x2x64xf32, #tpu.memory_space<vmem>>, vector<8x2x64xf32>
    %cst_207 = arith.constant dense<0.000000e+00> : vector<8x2x8xf32>
    %413 = tpu.matmul %412, %408, %cst_207 {dimension_numbers = #tpu.dot_dimension_numbers<[2], [0], [0, 1], [1], [0, 0, 0, 1, 1, 1], [], []>} : vector<8x2x64xf32>, vector<64x8xf32>, vector<8x2x8xf32> -> vector<8x2x8xf32>
    %414 = arith.addf %411, %413 : vector<8x2x8xf32>
    %415 = vector.shape_cast %409 : vector<1x8xf32> to vector<1x1x8xf32>
    %416 = vector.broadcast %415 : vector<1x1x8xf32> to vector<8x2x8xf32>
    %417 = arith.addf %414, %416 : vector<8x2x8xf32>
    %cst_208 = arith.constant dense<0xFF800000> : vector<8x2xf32>
    %418 = vector.multi_reduction <maximumf>, %417, %cst_208 [2] : vector<8x2x8xf32> to vector<8x2xf32>
    %419 = vector.shape_cast %418 : vector<8x2xf32> to vector<8x2x1xf32>
    %420 = tpu.iota {dimensions = array<i32: 2>} : vector<8x2x8xi32>
    %421 = vector.broadcast %419 : vector<8x2x1xf32> to vector<8x2x8xf32>
    %422 = arith.cmpf oge, %417, %421 : vector<8x2x8xf32>
    %c8_i32 = arith.constant 8 : i32
    %423 = vector.broadcast %c8_i32 : i32 to vector<8x2x8xi32>
    %424 = arith.select %422, %420, %423 : vector<8x2x8xi1>, vector<8x2x8xi32>
    %cst_209 = arith.constant dense<2147483647> : vector<8x2xi32>
    %425 = vector.multi_reduction <minsi>, %424, %cst_209 [2] : vector<8x2x8xi32> to vector<8x2xi32>
    %c0_210 = arith.constant 0 : index
    %c0_211 = arith.constant 0 : index
    %426 = vector.load %arg1[%c0_210, %c0_211] : memref<8x2xi32, #tpu.memory_space<vmem>>, vector<8x2xi32>
    %427 = arith.muli %426, %425 : vector<8x2xi32>
    %c0_212 = arith.constant 0 : index
    %c0_213 = arith.constant 0 : index
    %428 = vector.load %arg3[%c0_212, %c0_213] : memref<8x2xi32, #tpu.memory_space<vmem>>, vector<8x2xi32>
    tpu.vector_store %arg3[%c0_212, %c0_213], %427 {strides = array<i32>} : memref<8x2xi32, #tpu.memory_space<vmem>>, vector<8x2xi32>,
    return
  }
}

</mosaic_0001>

<bundles_post_ra>
// kernel: ner_forward.1
= control target key start
LH: loop header
LB: loop body
LE: loop exit
PB: predicated region body
PF: predicated region fallthrough
CT: control target
= control target key end

     0   :  { %8 = vsyncpa [#allocation5], 0  ;;  %s4994_s12 = smov [#allocation4]   ;;  %s5687_s0 = inlined_call_operand.vmem [shape: f32[8,2,32], index: 0, kind: input, shape index: {}]   ;;  %s5688_s1 = inlined_call_operand.vmem [shape: s32[8,2], index: 1, kind: input, shape index: {}]   ;;  %s5689_s2 = inlined_call_operand.hbm [shape: f32[200,256], index: 2, kind: input, shape index: {}]   ;;  %s5690_s3 = inlined_call_operand.vmem [shape: s32[8,2], index: 3, kind: output, shape index: {}]  }
   0x1   :  { %s18_s13 = sshll.u32 %s4994_s12, 4  ;;  %s4970_s16 = scalar_lea.hbm %s5689_s2, 6400  ;;  %s19_s13 = int_to_ptr.vmem [resolvable:$true] %s18_s13 }
   0x2   :  { %p4971_p0 = scmp.ne.s32.totalorder %s5689_s2, %s4970_s16  ;;  %p4974_p1 = scmp.lt.u32.totalorder %s4970_s16, %s5689_s2 }
   0x4   :  { %p4976_p2 = pnand %p4974_p1, %p4971_p0 }
   0x6   :  { %4979 = shalt.err (!%p4976_p2)
}
   0x7   :  { %s4980_s21 = scalar_lea.vmem %s19_s13, 6400  ;;  %p4985_p4 = scmp.lt.s32.totalorder %s19_s13, %s19_s13 }
   0x8   :  { %p4981_p3 = scmp.ne.s32.totalorder %s19_s13, %s4980_s21  ;;  %p4986_p5 = scmp.lt.s32.totalorder %s4980_s21, %s4980_s21 }
   0xa   :  { %p4987_p6 = por %p4986_p5, %p4985_p4 }
   0xc   :  { %p4988_p7 = pnand %p4987_p6, %p4981_p3 }
   0xe   :  { %4991 = shalt.err (!%p4988_p7)
}
   0xf   :  { %s4995_s22 = smov 256   ;;  %s4996_s23 = smov 16  }
  0x10   :  { %24 = dma.hbm_to_vmem [thread:$0]  %s5689_s2, 6400, %s19_s13, [#allocation5], %s4995_s22, %s4995_s22, %s4996_s23  }
  0x11   :  { %4992 = dma.done.wait [#allocation5], 6400  }
  0x12   :  { %4993 = vsyncadd [#allocation5], 4294960896  ;;  %v4997_v0 = vmov 0.0|0.0   ;;  %vm4998_vm0 = vmmov 0   ;;  %v4999_v1 = vmov 0.0   ;;  %v28_v2 = vld [vmem:[#allocation4 + $0x100] sm:$0xff] }
  0x13   :  { %4262 = vmatprep.subr.bf16.mxu0 %v4997_v0  ;;  %3936 = vmatprep.mubr.msk.f32.mxu0 %vm4998_vm0, %v4999_v1  ;;  %v29_v3 = vld [vmem:[#allocation4 + $0x110] sm:$0xff]  ;;  %v30_v4 = vld [vmem:[#allocation4 + $0x120] sm:$0xff]  ;;  %s5000_s2 = smov 64   ;;  %v3675_v17 = vld [vmem:[%s5687_s0 + $0xe] sm:$0x3]  ;;  %s5001_s28 = smov 32  }
  0x14   :  { %4274 = vmatprep.subr.bf16.mxu1 %v4997_v0  ;;  %3955 = vmatprep.mubr.msk.f32.mxu1 %vm4998_vm0, %v4999_v1  ;;  %v5042_v5 = vpack.c.bf16 %v29_v3, %v28_v2  ;;  %v31_v6 = vld [vmem:[#allocation4 + $0x130] sm:$0xff]  ;;  %v32_v7 = vld [vmem:[#allocation4 + $0x140] sm:$0xff]  ;;  %v4770_v9 = vpack.i.bf16 %v29_v3, %v28_v2  ;;  %vm88_vm1 = vcmask 261120   ;;  %vm90_vm2 = vcmask 523264   ;;  %v66_v46 = vld [vmem:[#allocation4 + $0x88] sm:$0xff] }
  0x15   :  { %v33_v8 = vld [vmem:[#allocation4 + $0x150] sm:$0xff]  ;;  %v5045_v11 = vpack.c.bf16 %v31_v6, %v30_v4  ;;  %v34_v12 = vld [vmem:[#allocation4 + $0x160] sm:$0xff]  ;;  %v4775_v14 = vpack.i.bf16 %v31_v6, %v30_v4  ;;  %v68_v47 = vld [vmem:[#allocation4 + $0x98] sm:$0xff]  ;;  %vm458_vm3 = vcmask 517120   ;;  %vm3457_vm4 = vcmask 58368  }
  0x16   :  { %v4780_v10 = vpack.i.bf16 %v33_v8, %v32_v7  ;;  %4264 = vmatpush3.bf16.msra.mxu0 %v5042_v5  ;;  %v35_v13 = vld [vmem:[#allocation4 + $0x170] sm:$0xff]  ;;  %4771 = vrot.lane.b32.xlu0 %v4770_v9, %s5000_s2  ;;  %v5051_v16 = vpack.c.bf16 %v33_v8, %v32_v7  ;;  %v81_v40 = vld [vmem:[%s5687_s0] sm:$0x3]  ;;  %v5101_v48 = vpack.c.bf16 %v68_v47, %v66_v46  ;;  %v70_v52 = vld [vmem:[#allocation4 + $0xa8] sm:$0xff] }
  0x17   :  { %4265 = vmatprep.subr.bf16.mxu0 %v4997_v0  ;;  %v4785_v15 = vpack.i.bf16 %v35_v13, %v34_v12  ;;  %v5060_v18 = vpack.c.bf16 %v35_v13, %v34_v12  ;;  %v65_v49 = vld [vmem:[#allocation4 + $0x80] sm:$0xff]  ;;  %v67_v50 = vld [vmem:[#allocation4 + $0x90] sm:$0xff]  ;;  %v72_v53 = vld [vmem:[#allocation4 + $0xb8] sm:$0xff] }
  0x18   :  { %4781 = vrot.lane.b32.xlu1 %v4780_v10, %s5000_s2  ;;  %v5103_v51 = vpack.c.bf16 %v67_v50, %v65_v49  ;;  %v5107_v54 = vpack.c.bf16 %v72_v53, %v70_v52  ;;  %v69_v55 = vld [vmem:[#allocation4 + $0xa0] sm:$0xff]  ;;  %v71_v56 = vld [vmem:[#allocation4 + $0xb0] sm:$0xff]  ;;  %v74_v58 = vld [vmem:[#allocation4 + $0xc8] sm:$0xff]  ;;  %v39_v50 = vlaneseq }
  0x19   :  { %v5109_v57 = vpack.c.bf16 %v71_v56, %v69_v55  ;;  %v76_v59 = vld [vmem:[#allocation4 + $0xd8] sm:$0xff]  ;;  %v73_v61 = vld [vmem:[#allocation4 + $0xc0] sm:$0xff]  ;;  %v75_v62 = vld [vmem:[#allocation4 + $0xd0] sm:$0xff] }
  0x1a   :  { %4267 = vmatpush3.bf16.msra.mxu0 %v5045_v11  ;;  %4776 = vrot.lane.b32.xlu0 %v4775_v14, %s5000_s2  ;;  %v5113_v60 = vpack.c.bf16 %v76_v59, %v74_v58  ;;  %v5115_v63 = vpack.c.bf16 %v75_v62, %v73_v61  ;;  %v78_v2 = vld [vmem:[#allocation4 + $0xe8] sm:$0xff]  ;;  %v80_v3 = vld [vmem:[#allocation4 + $0xf8] sm:$0xff]  ;;  %v77_v6 = vld [vmem:[#allocation4 + $0xe0] sm:$0xff] }
  0x1b   :  { %4268 = vmatprep.subr.bf16.mxu0 %v4997_v0  ;;  %v5119_v4 = vpack.c.bf16 %v80_v3, %v78_v2  ;;  %v79_v7 = vld [vmem:[#allocation4 + $0xf0] sm:$0xff]  ;;  %v50_v9 = vld [vmem:[#allocation4 + $0x8] sm:$0xff]  ;;  %v52_v10 = vld [vmem:[#allocation4 + $0x18] sm:$0xff] }
  0x1c   :  { %4786 = vrot.lane.b32.xlu1 %v4785_v15, %s5000_s2  ;;  %v5121_v8 = vpack.c.bf16 %v79_v7, %v77_v6  ;;  %v5125_v12 = vpack.c.bf16 %v52_v10, %v50_v9  ;;  %v61_v46 = vld [vmem:[#allocation4 + $0x60] sm:$0xff]  ;;  %v63_v47 = vld [vmem:[#allocation4 + $0x70] sm:$0xff] }
  0x1d   :  { %v5147_v49 = vpack.c.bf16 %v63_v47, %v61_v46  ;;  %v37_v53 = vld [vmem:[#allocation4 + $0x180] ss:$8 sm:$0x3] }
  0x1e   :  { %4270 = vmatpush3.bf16.msra.mxu0 %v5051_v16  ;;  %85 = vrot.lane.b32.xlu0 %v3675_v17, %s5001_s28 }
  0x1f   :  { %4271 = vmatprep.subr.bf16.mxu0 %v4997_v0 }
  0x22   :  { %4273 = vmatpush3.bf16.msra.mxu0 %v5060_v18 }
  0x23   :  { %4287 = vmatprep.subr.bf16.mxu0 %v5101_v48 }
  0x25   :  { %3937 = vmatmul.mubr.f32.vlgmr.msra.gmra.mrb[0].mxu0 %v4999_v1 }
  0x26   :  { %352 = vmatprep.mubr.f32.mxu0 %v4999_v1  ;;  %4289 = vmatpush1.bf16.msra.mxu0 %v5103_v51 }
  0x27   :  { %4291 = vmatprep.subr.bf16.mxu0 %v5107_v54 }
  0x2a   :  { %4293 = vmatpush1.bf16.msra.mxu0 %v5109_v57 }
  0x2b   :  { %4295 = vmatprep.subr.bf16.mxu0 %v5113_v60 }
  0x2e   :  { %4297 = vmatpush1.bf16.msra.mxu0 %v5115_v63 }
  0x2f   :  { %4299 = vmatprep.subr.bf16.mxu0 %v5119_v4 }
  0x32   :  { %4301 = vmatpush1.bf16.msra.mxu0 %v5121_v8 }
  0x33   :  { %4303 = vmatprep.subr.bf16.mxu0 %v5125_v12 }
  0x88   :  { %v4772_v19 = vpop.permute.xlu0 %4771 }
  0x89   :  { %v4774_v20 = vunpack.i.h.bf16 %v4772_v19  ;;  %v4773_v21 = vunpack.i.l.bf16 %v4772_v19 }
  0x8a   :  { %v4782_v22 = vpop.permute.xlu1 %4781 }
  0x8b   :  { %v5067_v23 = vpack.c.bf16 %v4774_v20, %v4773_v21  ;;  %v4784_v27 = vunpack.i.h.bf16 %v4782_v22  ;;  %v4783_v28 = vunpack.i.l.bf16 %v4782_v22  ;;  %v49_v20 = vld [vmem:[#allocation4] sm:$0xff]  ;;  %v51_v21 = vld [vmem:[#allocation4 + $0x10] sm:$0xff] }
  0x8c   :  { %v4777_v24 = vpop.permute.xlu0 %4776 }
  0x8d   :  { %v4779_v25 = vunpack.i.h.bf16 %v4777_v24  ;;  %v4778_v26 = vunpack.i.l.bf16 %v4777_v24  ;;  %4276 = vmatpush3.bf16.msra.mxu1 %v5067_v23  ;;  %v5073_v31 = vpack.c.bf16 %v4784_v27, %v4783_v28  ;;  %v54_v24 = vld [vmem:[#allocation4 + $0x28] sm:$0xff]  ;;  %v5128_v27 = vpack.c.bf16 %v51_v21, %v49_v20 }
  0x8e   :  { %4277 = vmatprep.subr.bf16.mxu1 %v4997_v0  ;;  %v4787_v29 = vpop.permute.xlu1 %4786 }
  0x8f   :  { %v5071_v30 = vpack.c.bf16 %v4779_v25, %v4778_v26  ;;  %v4789_v32 = vunpack.i.h.bf16 %v4787_v29  ;;  %v4788_v33 = vunpack.i.l.bf16 %v4787_v29  ;;  %v56_v25 = vld [vmem:[#allocation4 + $0x38] sm:$0xff] }
  0x90   :  { %v86_v41 = vpop.permute.xlu0 %85  ;;  %v5130_v29 = vpack.c.bf16 %v56_v25, %v54_v24 }
  0x91   :  { %4279 = vmatpush3.bf16.msra.mxu1 %v5071_v30  ;;  %v5077_v34 = vpack.c.bf16 %v4789_v32, %v4788_v33  ;;  %v89_v43 = vsel %vm88_vm1, %v81_v40, %v86_v41  ;;  %v53_v32 = vld [vmem:[#allocation4 + $0x20] sm:$0xff]  ;;  %v55_v33 = vld [vmem:[#allocation4 + $0x30] sm:$0xff]  ;;  %v62_v41 = vld [vmem:[#allocation4 + $0x68] sm:$0xff] }
  0x92   :  { %4280 = vmatprep.subr.bf16.mxu1 %v4997_v0  ;;  %v59_v40 = vld [vmem:[#allocation4 + $0x50] sm:$0xff] }
  0x95   :  { %4282 = vmatpush3.bf16.msra.mxu1 %v5073_v31 }
  0x96   :  { %4283 = vmatprep.subr.bf16.mxu1 %v4997_v0 }
  0x99   :  { %4285 = vmatpush3.bf16.msra.mxu1 %v5077_v34 }
  0x9a   :  { %4318 = vmatprep.subr.bf16.mxu1 %v4997_v0 }
  0xf8   :  { %v160_v35 = vpop.f32.mrb[0].mxu0 }
  0xf9   :  { %v3676_v36 = vmul.f32 -1.442695, %v160_v35  ;;  %v3938_v37 = vpop.f32.mrb[1].mxu0  ;;  %v58_v35 = vld [vmem:[#allocation4 + $0x48] sm:$0xff] }
  0xfa   :  { %v5134_v37 = vpack.c.bf16 %v55_v33, %v53_v32 }
  0xfb   :  { %4810 = vpow2.f32 %v3676_v36  ;;  %v60_v36 = vld [vmem:[#allocation4 + $0x58] sm:$0xff] }
 0x105   :  { %v4811_v38 = vpop.eup %4810 }
 0x106   :  { %v167_v39 = vadd.f32 1.0, %v4811_v38  ;;  %v5138_v38 = vpack.c.bf16 %v60_v36, %v58_v35 }
 0x108   :  { %4812 = vrcp.f32 %v167_v39  ;;  %v57_v39 = vld [vmem:[#allocation4 + $0x40] sm:$0xff] }
 0x112   :  { %v4813_v42 = vpop.eup %4812 }
 0x113   :  { %v170_v44 = vmul.f32 2.0, %v4813_v42  ;;  %v64_v42 = vld [vmem:[#allocation4 + $0x78] sm:$0xff] }
 0x115   :  { %v5087_v45 = vmul.f32 %v170_v44, %v89_v43  ;;  %v5141_v43 = vpack.c.bf16 %v59_v40, %v57_v39  ;;  %v5144_v44 = vpack.c.bf16 %v64_v42, %v62_v41  ;;  %v3683_v40 = vld [vmem:[%s5687_s0 + $0x2] sm:$0x3] }
 0x117   :  { %3956 = vmatmul.mubr.msk.f32.vlgmr.msra.gmra.mrb[0].mxu1 %vm90_vm2, %v5087_v45 }
 0x118   :  { %4320 = vmatpush3.bf16.msra.mxu1 %v5042_v5  ;;  %3974 = vmatprep.mubr.msk.f32.mxu1 %vm4998_vm0, %v4999_v1 }
 0x119   :  { %4321 = vmatprep.subr.bf16.mxu1 %v4997_v0 }
 0x11c   :  { %4323 = vmatpush3.bf16.msra.mxu1 %v5045_v11 }
 0x11d   :  { %4324 = vmatprep.subr.bf16.mxu1 %v4997_v0 }
 0x120   :  { %4326 = vmatpush3.bf16.msra.mxu1 %v5051_v16 }
 0x121   :  { %4327 = vmatprep.subr.bf16.mxu1 %v4997_v0 }
 0x124   :  { %4329 = vmatpush3.bf16.msra.mxu1 %v5060_v18 }
 0x125   :  { %4330 = vmatprep.subr.bf16.mxu1 %v4997_v0 }
 0x1ea   :  { %v273_v13 = vpop.f32.mrb[0].mxu1 }
 0x1eb   :  { %v3678_v14 = vmul.f32 -1.442695, %v273_v13  ;;  %v3957_v15 = vpop.f32.mrb[1].mxu1 }
 0x1ed   :  { %4814 = vpow2.f32 %v3678_v14 }
 0x1f7   :  { %v4815_v17 = vpop.eup %4814 }
 0x1f8   :  { %v280_v19 = vadd.f32 1.0, %v4815_v17 }
 0x1fa   :  { %4816 = vrcp.f32 %v280_v19 }
 0x204   :  { %v4817_v22 = vpop.eup %4816 }
 0x205   :  { %v283_v26 = vmul.f32 2.0, %v4817_v22 }
 0x207   :  { %v284_v28 = vmul.f32 0.0, %v283_v26  ;;  %v3684_v26 = vld [vmem:[%s5687_s0 + $0xc] sm:$0x3] }
 0x209   :  { %3679 = vmatmul.mubr.msk.f32.vlgmr.msra.gmra.mrb[2].mxu0 %vm90_vm2, %v284_v28 }
 0x20a   :  { %4305 = vmatpush1.bf16.msra.mxu0 %v5128_v27  ;;  %423 = vmatprep.mubr.f32.mxu0 %v4999_v1 }
 0x20b   :  { %4307 = vmatprep.subr.bf16.mxu0 %v5130_v29 }
 0x20e   :  { %4309 = vmatpush1.bf16.msra.mxu0 %v5134_v37 }
 0x20f   :  { %4311 = vmatprep.subr.bf16.mxu0 %v5138_v38 }
 0x212   :  { %4313 = vmatpush1.bf16.msra.mxu0 %v5141_v43 }
 0x213   :  { %4315 = vmatprep.subr.bf16.mxu0 %v5144_v44 }
 0x216   :  { %4317 = vmatpush1.bf16.msra.mxu0 %v5147_v49 }
 0x217   :  { %4343 = vmatprep.subr.bf16.mxu0 %v5101_v48 }
 0x219   :  { %3680 = vmatmul.mubr.msk.f32.vlgmr.msra.gmra.mrb[2].mxu0 %vm90_vm2, %v5087_v45  ;;  %v5164_v45 = vshrl.u32 %v39_v50, 7 }
 0x21a   :  { %4345 = vmatpush1.bf16.msra.mxu0 %v5103_v51  ;;  %731 = vmatprep.mubr.f32.mxu0 %v4999_v1 }
 0x21b   :  { %4347 = vmatprep.subr.bf16.mxu0 %v5107_v54  ;;  %v41_v52 = vsub.s32 0, %v5164_v45  ;;  %v45_v62 = vsub.s32 1, %v5164_v45 }
 0x21d   :  { %v5167_v55 = vrot.slane %v37_v53, %v41_v52  ;;  %v5171_v2 = vrot.slane %v37_v53, %v45_v62 }
 0x21e   :  { %4349 = vmatpush1.bf16.msra.mxu0 %v5109_v57 }
 0x21f   :  { %4351 = vmatprep.subr.bf16.mxu0 %v5113_v60 }
 0x222   :  { %4353 = vmatpush1.bf16.msra.mxu0 %v5115_v63 }
 0x223   :  { %4355 = vmatprep.subr.bf16.mxu0 %v5119_v4 }
 0x226   :  { %4357 = vmatpush1.bf16.msra.mxu0 %v5121_v8 }
 0x227   :  { %4359 = vmatprep.subr.bf16.mxu0 %v5125_v12 }
 0x2ec   :  { %v425_v56 = vpop.f32.mrb[2].mxu0 }
 0x2ed   :  { %v430_v58 = vadd.f32 %v425_v56, %v5167_v55  ;;  %v427_v59 = vpop.f32.mrb[3].mxu0 }
 0x2ee   :  { %v431_v3 = vadd.f32 %v427_v59, %v5171_v2 }
 0x2ef   :  { %v3681_v61 = vmul.f32 -1.442695, %v430_v58 }
 0x2f0   :  { %v3682_v14 = vmul.f32 -1.442695, %v431_v3 }
 0x2f1   :  { %4818 = vpow2.f32 %v3681_v61 }
 0x2f2   :  { %4820 = vtanh.f32 %v431_v3 }
 0x2fb   :  { %v4819_v6 = vpop.eup %4818 }
 0x2fc   :  { %v438_v7 = vadd.f32 1.0, %v4819_v6  ;;  %v4821_v9 = vpop.eup %4820 }
 0x2fe   :  { %4822 = vrcp.f32 %v438_v7 }
 0x2ff   :  { %4824 = vpow2.f32 %v3682_v14 }
 0x308   :  { %v4823_v10 = vpop.eup %4822 }
 0x309   :  { %v446_v13 = vmul.f32 %v4823_v10, %v4821_v9  ;;  %v4825_v15 = vpop.eup %4824  ;;  %v445_v19 = vmul.f32 0.0, %v4823_v10 }
 0x30a   :  { %v439_v17 = vadd.f32 1.0, %v4825_v15 }
 0x30b   :  { %448 = vrot.lane.b32.xlu1 %v446_v13, %s5000_s2 }
 0x30c   :  { %4826 = vrcp.f32 %v439_v17 }
 0x30f   :  { %499 = vrot.lane.b32.xlu1 %v3684_v26, %s5001_s28 }
 0x316   :  { %v4827_v22 = vpop.eup %4826 }
 0x37d   :  { %v449_v20 = vpop.permute.xlu1 %448 }
 0x37e   :  { %v5175_v21 = vadd.f32 %v449_v20, %v445_v19 }
 0x380   :  { %4828 = vtanh.f32 %v5175_v21 }
 0x381   :  { %v500_v41 = vpop.permute.xlu1 %499 }
 0x382   :  { %v502_v46 = vsel %vm88_vm1, %v3683_v40, %v500_v41  ;;  %v3694_v40 = vld [vmem:[%s5687_s0 + $0xa] sm:$0x3] }
 0x38a   :  { %v4829_v24 = vpop.eup %4828 }
 0x38b   :  { %v453_v25 = vmul.f32 %v4829_v24, %v4827_v22 }
 0x38d   :  { %455 = vrot.lane.b32.xlu0 %v453_v25, %s5000_s2 }
 0x3ff   :  { %v456_v28 = vpop.permute.xlu0 %455 }
 0x400   :  { %459 = vst.msk [vmem:[#allocation2] sm:$0x3] %vm458_vm3, %v456_v28  ;;  %461 = vst.msk [vmem:[#allocation3 + $0xe] sm:$0x3] %vm458_vm3, %v456_v28  ;;  %3975 = vmatmul.mubr.msk.f32.vlgmr.msra.gmra.mrb[2].mxu1 %vm90_vm2, %v456_v28 }
 0x401   :  { %4332 = vmatpush3.bf16.msra.mxu1 %v5067_v23  ;;  %3993 = vmatprep.mubr.msk.f32.mxu1 %vm4998_vm0, %v4999_v1 }
 0x402   :  { %4333 = vmatprep.subr.bf16.mxu1 %v4997_v0 }
 0x405   :  { %4335 = vmatpush3.bf16.msra.mxu1 %v5071_v30 }
 0x406   :  { %4336 = vmatprep.subr.bf16.mxu1 %v4997_v0 }
 0x409   :  { %4338 = vmatpush3.bf16.msra.mxu1 %v5073_v31 }
 0x40a   :  { %4339 = vmatprep.subr.bf16.mxu1 %v4997_v0 }
 0x40d   :  { %4341 = vmatpush3.bf16.msra.mxu1 %v5077_v34 }
 0x40e   :  { %4374 = vmatprep.subr.bf16.mxu1 %v4997_v0 }
 0x4d3   :  { %v571_v32 = vpop.f32.mrb[2].mxu1 }
 0x4d4   :  { %v3686_v33 = vmul.f32 -1.442695, %v571_v32  ;;  %v3976_v35 = vpop.f32.mrb[3].mxu1 }
 0x4d6   :  { %4830 = vpow2.f32 %v3686_v33 }
 0x4e0   :  { %v4831_v36 = vpop.eup %4830 }
 0x4e1   :  { %v578_v39 = vadd.f32 1.0, %v4831_v36 }
 0x4e3   :  { %4832 = vrcp.f32 %v578_v39 }
 0x4ed   :  { %v4833_v42 = vpop.eup %4832 }
 0x4ee   :  { %v581_v47 = vmul.f32 2.0, %v4833_v42 }
 0x4f0   :  { %v582_v52 = vmul.f32 %v581_v47, %v502_v46 }
 0x4f2   :  { %3994 = vmatmul.mubr.msk.f32.vlgmr.msra.gmra.mrb[4].mxu1 %vm90_vm2, %v582_v52 }
 0x4f3   :  { %4376 = vmatpush3.bf16.msra.mxu1 %v5042_v5  ;;  %4012 = vmatprep.mubr.msk.f32.mxu1 %vm4998_vm0, %v4999_v1 }
 0x4f4   :  { %4377 = vmatprep.subr.bf16.mxu1 %v4997_v0 }
 0x4f7   :  { %4379 = vmatpush3.bf16.msra.mxu1 %v5045_v11 }
 0x4f8   :  { %4380 = vmatprep.subr.bf16.mxu1 %v4997_v0 }
 0x4fb   :  { %4382 = vmatpush3.bf16.msra.mxu1 %v5051_v16 }
 0x4fc   :  { %4383 = vmatprep.subr.bf16.mxu1 %v4997_v0 }
 0x4ff   :  { %4385 = vmatpush3.bf16.msra.mxu1 %v5060_v18 }
 0x500   :  { %4386 = vmatprep.subr.bf16.mxu1 %v4997_v0 }
 0x5c5   :  { %v652_v53 = vpop.f32.mrb[4].mxu1 }
 0x5c6   :  { %v3688_v56 = vmul.f32 -1.442695, %v652_v53  ;;  %v3995_v58 = vpop.f32.mrb[5].mxu1  ;;  %v3693_v53 = vld [vmem:[%s5687_s0 + $0x4] sm:$0x3] }
 0x5c8   :  { %4834 = vpow2.f32 %v3688_v56 }
 0x5d2   :  { %v4835_v59 = vpop.eup %4834 }
 0x5d3   :  { %v659_v61 = vadd.f32 1.0, %v4835_v59 }
 0x5d5   :  { %4836 = vrcp.f32 %v659_v61 }
 0x5df   :  { %v4837_v62 = vpop.eup %4836 }
 0x5e0   :  { %v662_v3 = vmul.f32 2.0, %v4837_v62 }
 0x5e2   :  { %v663_v6 = vmul.f32 %v662_v3, %v456_v28 }
 0x5e4   :  { %3689 = vmatmul.mubr.msk.f32.vlgmr.msra.gmra.mrb[4].mxu0 %vm90_vm2, %v663_v6 }
 0x5e5   :  { %4361 = vmatpush1.bf16.msra.mxu0 %v5128_v27  ;;  %802 = vmatprep.mubr.f32.mxu0 %v4999_v1 }
 0x5e6   :  { %4363 = vmatprep.subr.bf16.mxu0 %v5130_v29 }
 0x5e9   :  { %4365 = vmatpush1.bf16.msra.mxu0 %v5134_v37 }
 0x5ea   :  { %4367 = vmatprep.subr.bf16.mxu0 %v5138_v38 }
 0x5ed   :  { %4369 = vmatpush1.bf16.msra.mxu0 %v5141_v43 }
 0x5ee   :  { %4371 = vmatprep.subr.bf16.mxu0 %v5144_v44 }
 0x5f1   :  { %4373 = vmatpush1.bf16.msra.mxu0 %v5147_v49 }
 0x5f2   :  { %4399 = vmatprep.subr.bf16.mxu0 %v5101_v48 }
 0x5f4   :  { %3690 = vmatmul.mubr.msk.f32.vlgmr.msra.gmra.mrb[4].mxu0 %vm90_vm2, %v582_v52 }
 0x5f5   :  { %4401 = vmatpush1.bf16.msra.mxu0 %v5103_v51  ;;  %1110 = vmatprep.mubr.f32.mxu0 %v4999_v1 }
 0x5f6   :  { %4403 = vmatprep.subr.bf16.mxu0 %v5107_v54 }
 0x5f9   :  { %4405 = vmatpush1.bf16.msra.mxu0 %v5109_v57 }
 0x5fa   :  { %4407 = vmatprep.subr.bf16.mxu0 %v5113_v60 }
 0x5fd   :  { %4409 = vmatpush1.bf16.msra.mxu0 %v5115_v63 }
 0x5fe   :  { %4411 = vmatprep.subr.bf16.mxu0 %v5119_v4 }
 0x601   :  { %4413 = vmatpush1.bf16.msra.mxu0 %v5121_v8 }
 0x602   :  { %4415 = vmatprep.subr.bf16.mxu0 %v5125_v12 }
 0x6c7   :  { %v804_v7 = vpop.f32.mrb[4].mxu0 }
 0x6c8   :  { %v809_v9 = vadd.f32 %v804_v7, %v5167_v55  ;;  %v806_v10 = vpop.f32.mrb[5].mxu0 }
 0x6c9   :  { %v810_v14 = vadd.f32 %v806_v10, %v5171_v2 }
 0x6ca   :  { %v3691_v13 = vmul.f32 -1.442695, %v809_v9 }
 0x6cb   :  { %v3692_v24 = vmul.f32 -1.442695, %v810_v14 }
 0x6cc   :  { %4838 = vpow2.f32 %v3691_v13 }
 0x6cd   :  { %4840 = vtanh.f32 %v810_v14 }
 0x6d6   :  { %v4839_v15 = vpop.eup %4838 }
 0x6d7   :  { %v817_v17 = vadd.f32 1.0, %v4839_v15  ;;  %v4841_v19 = vpop.eup %4840 }
 0x6d9   :  { %4842 = vrcp.f32 %v817_v17 }
 0x6da   :  { %4844 = vpow2.f32 %v3692_v24 }
 0x6e3   :  { %v4843_v20 = vpop.eup %4842 }
 0x6e4   :  { %v825_v22 = vmul.f32 %v4843_v20, %v4841_v19  ;;  %v4845_v25 = vpop.eup %4844  ;;  %v824_v28 = vmul.f32 %v4843_v20, %v5175_v21 }
 0x6e5   :  { %v818_v26 = vadd.f32 1.0, %v4845_v25 }
 0x6e6   :  { %827 = vrot.lane.b32.xlu0 %v825_v22, %s5000_s2 }
 0x6e7   :  { %4846 = vrcp.f32 %v818_v26 }
 0x6ea   :  { %878 = vrot.lane.b32.xlu0 %v3694_v40, %s5001_s28 }
 0x6f1   :  { %v4847_v35 = vpop.eup %4846 }
 0x758   :  { %v828_v32 = vpop.permute.xlu0 %827 }
 0x759   :  { %v5235_v33 = vadd.f32 %v828_v32, %v824_v28 }
 0x75b   :  { %4848 = vtanh.f32 %v5235_v33 }
 0x75c   :  { %v879_v56 = vpop.permute.xlu0 %878 }
 0x75d   :  { %v881_v59 = vsel %vm88_vm1, %v3693_v53, %v879_v56 }
 0x765   :  { %v4849_v36 = vpop.eup %4848 }
 0x766   :  { %v832_v39 = vmul.f32 %v4849_v36, %v4847_v35  ;;  %v3704_v36 = vld [vmem:[%s5687_s0 + $0x8] sm:$0x3] }
 0x768   :  { %834 = vrot.lane.b32.xlu1 %v832_v39, %s5000_s2 }
 0x7da   :  { %v835_v41 = vpop.permute.xlu1 %834 }
 0x7db   :  { %838 = vst.msk [vmem:[#allocation2 + $0x2] sm:$0x3] %vm458_vm3, %v835_v41  ;;  %840 = vst.msk [vmem:[#allocation3 + $0xc] sm:$0x3] %vm458_vm3, %v835_v41  ;;  %4013 = vmatmul.mubr.msk.f32.vlgmr.msra.gmra.mrb[6].mxu1 %vm90_vm2, %v835_v41 }
 0x7dc   :  { %4388 = vmatpush3.bf16.msra.mxu1 %v5067_v23  ;;  %4031 = vmatprep.mubr.msk.f32.mxu1 %vm4998_vm0, %v4999_v1 }
 0x7dd   :  { %4389 = vmatprep.subr.bf16.mxu1 %v4997_v0 }
 0x7e0   :  { %4391 = vmatpush3.bf16.msra.mxu1 %v5071_v30 }
 0x7e1   :  { %4392 = vmatprep.subr.bf16.mxu1 %v4997_v0 }
 0x7e4   :  { %4394 = vmatpush3.bf16.msra.mxu1 %v5073_v31 }
 0x7e5   :  { %4395 = vmatprep.subr.bf16.mxu1 %v4997_v0 }
 0x7e8   :  { %4397 = vmatpush3.bf16.msra.mxu1 %v5077_v34 }
 0x7e9   :  { %4430 = vmatprep.subr.bf16.mxu1 %v4997_v0 }
 0x8ae   :  { %v950_v21 = vpop.f32.mrb[6].mxu1 }
 0x8af   :  { %v3696_v42 = vmul.f32 -1.442695, %v950_v21  ;;  %v4014_v46 = vpop.f32.mrb[7].mxu1 }
 0x8b0   :  { %v3703_v46 = vld [vmem:[%s5687_s0 + $0x6] sm:$0x3] }
 0x8b1   :  { %4850 = vpow2.f32 %v3696_v42 }
 0x8bb   :  { %v4851_v47 = vpop.eup %4850 }
 0x8bc   :  { %v957_v52 = vadd.f32 1.0, %v4851_v47 }
 0x8be   :  { %4852 = vrcp.f32 %v957_v52 }
 0x8c8   :  { %v4853_v58 = vpop.eup %4852 }
 0x8c9   :  { %v960_v61 = vmul.f32 2.0, %v4853_v58 }
 0x8cb   :  { %v961_v62 = vmul.f32 %v960_v61, %v881_v59 }
 0x8cd   :  { %4032 = vmatmul.mubr.msk.f32.vlgmr.msra.gmra.mrb[8].mxu1 %vm90_vm2, %v961_v62 }
 0x8ce   :  { %4432 = vmatpush3.bf16.msra.mxu1 %v5042_v5  ;;  %4050 = vmatprep.mubr.msk.f32.mxu1 %vm4998_vm0, %v4999_v1 }
 0x8cf   :  { %4433 = vmatprep.subr.bf16.mxu1 %v4997_v0 }
 0x8d2   :  { %4435 = vmatpush3.bf16.msra.mxu1 %v5045_v11 }
 0x8d3   :  { %4436 = vmatprep.subr.bf16.mxu1 %v4997_v0 }
 0x8d6   :  { %4438 = vmatpush3.bf16.msra.mxu1 %v5051_v16 }
 0x8d7   :  { %4439 = vmatprep.subr.bf16.mxu1 %v4997_v0 }
 0x8da   :  { %4441 = vmatpush3.bf16.msra.mxu1 %v5060_v18 }
 0x8db   :  { %4442 = vmatprep.subr.bf16.mxu1 %v4997_v0 }
 0x9a0   :  { %v1031_v3 = vpop.f32.mrb[8].mxu1 }
 0x9a1   :  { %v3698_v6 = vmul.f32 -1.442695, %v1031_v3  ;;  %v4033_v7 = vpop.f32.mrb[9].mxu1 }
 0x9a3   :  { %4854 = vpow2.f32 %v3698_v6 }
 0x9ad   :  { %v4855_v9 = vpop.eup %4854 }
 0x9ae   :  { %v1038_v10 = vadd.f32 1.0, %v4855_v9 }
 0x9b0   :  { %4856 = vrcp.f32 %v1038_v10 }
 0x9ba   :  { %v4857_v13 = vpop.eup %4856 }
 0x9bb   :  { %v1041_v14 = vmul.f32 2.0, %v4857_v13 }
 0x9bd   :  { %v1042_v15 = vmul.f32 %v1041_v14, %v835_v41 }
 0x9bf   :  { %3699 = vmatmul.mubr.msk.f32.vlgmr.msra.gmra.mrb[6].mxu0 %vm90_vm2, %v1042_v15 }
 0x9c0   :  { %4417 = vmatpush1.bf16.msra.mxu0 %v5128_v27  ;;  %1181 = vmatprep.mubr.f32.mxu0 %v4999_v1 }
 0x9c1   :  { %4419 = vmatprep.subr.bf16.mxu0 %v5130_v29 }
 0x9c4   :  { %4421 = vmatpush1.bf16.msra.mxu0 %v5134_v37 }
 0x9c5   :  { %4423 = vmatprep.subr.bf16.mxu0 %v5138_v38 }
 0x9c8   :  { %4425 = vmatpush1.bf16.msra.mxu0 %v5141_v43 }
 0x9c9   :  { %4427 = vmatprep.subr.bf16.mxu0 %v5144_v44 }
 0x9cc   :  { %4429 = vmatpush1.bf16.msra.mxu0 %v5147_v49 }
 0x9cd   :  { %4455 = vmatprep.subr.bf16.mxu0 %v5101_v48 }
 0x9cf   :  { %3700 = vmatmul.mubr.msk.f32.vlgmr.msra.gmra.mrb[6].mxu0 %vm90_vm2, %v961_v62 }
 0x9d0   :  { %4457 = vmatpush1.bf16.msra.mxu0 %v5103_v51  ;;  %1489 = vmatprep.mubr.f32.mxu0 %v4999_v1 }
 0x9d1   :  { %4459 = vmatprep.subr.bf16.mxu0 %v5107_v54 }
 0x9d4   :  { %4461 = vmatpush1.bf16.msra.mxu0 %v5109_v57 }
 0x9d5   :  { %4463 = vmatprep.subr.bf16.mxu0 %v5113_v60 }
 0x9d8   :  { %4465 = vmatpush1.bf16.msra.mxu0 %v5115_v63 }
 0x9d9   :  { %4467 = vmatprep.subr.bf16.mxu0 %v5119_v4 }
 0x9dc   :  { %4469 = vmatpush1.bf16.msra.mxu0 %v5121_v8 }
 0x9dd   :  { %4471 = vmatprep.subr.bf16.mxu0 %v5125_v12 }
 0xaa2   :  { %v1183_v48 = vpop.f32.mrb[6].mxu0 }
 0xaa3   :  { %v1188_v17 = vadd.f32 %v1183_v48, %v5167_v55  ;;  %v1185_v51 = vpop.f32.mrb[7].mxu0 }
 0xaa4   :  { %v1189_v54 = vadd.f32 %v1185_v51, %v5171_v2 }
 0xaa5   :  { %v3701_v19 = vmul.f32 -1.442695, %v1188_v17 }
 0xaa6   :  { %v3702_v4 = vmul.f32 -1.442695, %v1189_v54 }
 0xaa7   :  { %4858 = vpow2.f32 %v3701_v19 }
 0xaa8   :  { %4860 = vtanh.f32 %v1189_v54 }
 0xab1   :  { %v4859_v20 = vpop.eup %4858 }
 0xab2   :  { %v1196_v57 = vadd.f32 1.0, %v4859_v20  ;;  %v4861_v60 = vpop.eup %4860 }
 0xab4   :  { %4862 = vrcp.f32 %v1196_v57 }
 0xab5   :  { %4864 = vpow2.f32 %v3702_v4 }
 0xabe   :  { %v4863_v63 = vpop.eup %4862 }
 0xabf   :  { %v1204_v22 = vmul.f32 %v4863_v63, %v4861_v60  ;;  %v4865_v8 = vpop.eup %4864  ;;  %v1203_v24 = vmul.f32 %v4863_v63, %v5235_v33 }
 0xac0   :  { %v1197_v12 = vadd.f32 1.0, %v4865_v8 }
 0xac1   :  { %1206 = vrot.lane.b32.xlu1 %v1204_v22, %s5000_s2  ;;  %v3714_v22 = vld [vmem:[%s5687_s0 + $0x6] sm:$0x3] }
 0xac2   :  { %4866 = vrcp.f32 %v1197_v12 }
 0xac5   :  { %1257 = vrot.lane.b32.xlu1 %v3704_v36, %s5001_s28 }
 0xacc   :  { %v4867_v28 = vpop.eup %4866 }
 0xb33   :  { %v1207_v25 = vpop.permute.xlu1 %1206 }
 0xb34   :  { %v5295_v26 = vadd.f32 %v1207_v25, %v1203_v24 }
 0xb36   :  { %4868 = vtanh.f32 %v5295_v26 }
 0xb37   :  { %v1258_v47 = vpop.permute.xlu1 %1257 }
 0xb38   :  { %v1260_v53 = vsel %vm88_vm1, %v3703_v46, %v1258_v47  ;;  %v1617_v46 = vld [vmem:[#allocation4 + $0x90] sm:$0xff] }
 0xb40   :  { %v4869_v32 = vpop.eup %4868 }
 0xb41   :  { %v1211_v35 = vmul.f32 %v4869_v32, %v4867_v28  ;;  %v3713_v28 = vld [vmem:[%s5687_s0 + $0x8] sm:$0x3] }
 0xb43   :  { %1213 = vrot.lane.b32.xlu0 %v1211_v35, %s5000_s2 }
 0xbb5   :  { %v1214_v39 = vpop.permute.xlu0 %1213 }
 0xbb6   :  { %1217 = vst.msk [vmem:[#allocation2 + $0x4] sm:$0x3] %vm458_vm3, %v1214_v39  ;;  %1219 = vst.msk [vmem:[#allocation3 + $0xa] sm:$0x3] %vm458_vm3, %v1214_v39  ;;  %4051 = vmatmul.mubr.msk.f32.vlgmr.msra.gmra.mrb[10].mxu1 %vm90_vm2, %v1214_v39 }
 0xbb7   :  { %4444 = vmatpush3.bf16.msra.mxu1 %v5067_v23  ;;  %4069 = vmatprep.mubr.msk.f32.mxu1 %vm4998_vm0, %v4999_v1 }
 0xbb8   :  { %4445 = vmatprep.subr.bf16.mxu1 %v4997_v0 }
 0xbbb   :  { %4447 = vmatpush3.bf16.msra.mxu1 %v5071_v30 }
 0xbbc   :  { %4448 = vmatprep.subr.bf16.mxu1 %v4997_v0 }
 0xbbf   :  { %4450 = vmatpush3.bf16.msra.mxu1 %v5073_v31 }
 0xbc0   :  { %4451 = vmatprep.subr.bf16.mxu1 %v4997_v0 }
 0xbc3   :  { %4453 = vmatpush3.bf16.msra.mxu1 %v5077_v34 }
 0xbc4   :  { %4486 = vmatprep.subr.bf16.mxu1 %v4997_v0 }
 0xc89   :  { %v1329_v33 = vpop.f32.mrb[10].mxu1 }
 0xc8a   :  { %v3706_v40 = vmul.f32 -1.442695, %v1329_v33  ;;  %v4052_v41 = vpop.f32.mrb[11].mxu1 }
 0xc8b   :  { %v1618_v41 = vld [vmem:[#allocation4 + $0x98] sm:$0xff] }
 0xc8c   :  { %4870 = vpow2.f32 %v3706_v40  ;;  %v1616_v40 = vld [vmem:[#allocation4 + $0x88] sm:$0xff] }
 0xc96   :  { %v4871_v21 = vpop.eup %4870 }
 0xc97   :  { %v1336_v42 = vadd.f32 1.0, %v4871_v21  ;;  %v5390_v21 = vpack.c.bf16 %v1618_v41, %v1616_v40  ;;  %v1607_v40 = vld [vmem:[#allocation4 + $0x40] sm:$0xff]  ;;  %v1612_v41 = vld [vmem:[#allocation4 + $0x68] sm:$0xff] }
 0xc99   :  { %4872 = vrcp.f32 %v1336_v42  ;;  %v1615_v42 = vld [vmem:[#allocation4 + $0x80] sm:$0xff] }
 0xc9a   :  { %v5392_v47 = vpack.c.bf16 %v1617_v46, %v1615_v42  ;;  %v1614_v42 = vld [vmem:[#allocation4 + $0x78] sm:$0xff] }
 0xca3   :  { %v4873_v52 = vpop.eup %4872 }
 0xca4   :  { %v1339_v56 = vmul.f32 2.0, %v4873_v52  ;;  %v1620_v52 = vld [vmem:[#allocation4 + $0xa8] sm:$0xff] }
 0xca6   :  { %v1340_v58 = vmul.f32 %v1339_v56, %v1260_v53  ;;  %v1622_v53 = vld [vmem:[#allocation4 + $0xb8] sm:$0xff] }
 0xca7   :  { %v5396_v56 = vpack.c.bf16 %v1622_v53, %v1620_v52  ;;  %v5434_v52 = vpack.c.bf16 %v1614_v42, %v1612_v41  ;;  %v1611_v53 = vld [vmem:[#allocation4 + $0x60] sm:$0xff] }
 0xca8   :  { %4070 = vmatmul.mubr.msk.f32.vlgmr.msra.gmra.mrb[12].mxu1 %vm90_vm2, %v1340_v58 }
 0xca9   :  { %4488 = vmatpush3.bf16.msra.mxu1 %v5042_v5  ;;  %4088 = vmatprep.mubr.msk.f32.mxu1 %vm4998_vm0, %v4999_v1 }
 0xcaa   :  { %4489 = vmatprep.subr.bf16.mxu1 %v4997_v0 }
 0xcad   :  { %4491 = vmatpush3.bf16.msra.mxu1 %v5045_v11 }
 0xcae   :  { %4492 = vmatprep.subr.bf16.mxu1 %v4997_v0 }
 0xcb1   :  { %4494 = vmatpush3.bf16.msra.mxu1 %v5051_v16 }
 0xcb2   :  { %4495 = vmatprep.subr.bf16.mxu1 %v4997_v0 }
 0xcb5   :  { %4497 = vmatpush3.bf16.msra.mxu1 %v5060_v18 }
 0xcb6   :  { %4498 = vmatprep.subr.bf16.mxu1 %v4997_v0 }
 0xd7b   :  { %v1410_v59 = vpop.f32.mrb[12].mxu1 }
 0xd7c   :  { %v3708_v61 = vmul.f32 -1.442695, %v1410_v59  ;;  %v4071_v62 = vpop.f32.mrb[13].mxu1  ;;  %v1621_v59 = vld [vmem:[#allocation4 + $0xb0] sm:$0xff] }
 0xd7d   :  { %v1624_v62 = vld [vmem:[#allocation4 + $0xc8] sm:$0xff] }
 0xd7e   :  { %4874 = vpow2.f32 %v3708_v61 }
 0xd88   :  { %v4875_v3 = vpop.eup %4874 }
 0xd89   :  { %v1417_v6 = vadd.f32 1.0, %v4875_v3  ;;  %v1626_v3 = vld [vmem:[#allocation4 + $0xd8] sm:$0xff] }
 0xd8b   :  { %4876 = vrcp.f32 %v1417_v6  ;;  %v5402_v6 = vpack.c.bf16 %v1626_v3, %v1624_v62 }
 0xd95   :  { %v4877_v7 = vpop.eup %4876 }
 0xd96   :  { %v1420_v9 = vmul.f32 2.0, %v4877_v7  ;;  %v1623_v7 = vld [vmem:[#allocation4 + $0xc0] sm:$0xff] }
 0xd98   :  { %v1421_v10 = vmul.f32 %v1420_v9, %v1214_v39  ;;  %v1625_v9 = vld [vmem:[#allocation4 + $0xd0] sm:$0xff] }
 0xd9a   :  { %3709 = vmatmul.mubr.msk.f32.vlgmr.msra.gmra.mrb[8].mxu0 %vm90_vm2, %v1421_v10  ;;  %v5404_v10 = vpack.c.bf16 %v1625_v9, %v1623_v7 }
 0xd9b   :  { %4473 = vmatpush1.bf16.msra.mxu0 %v5128_v27  ;;  %1560 = vmatprep.mubr.f32.mxu0 %v4999_v1 }
 0xd9c   :  { %4475 = vmatprep.subr.bf16.mxu0 %v5130_v29 }
 0xd9f   :  { %4477 = vmatpush1.bf16.msra.mxu0 %v5134_v37 }
 0xda0   :  { %4479 = vmatprep.subr.bf16.mxu0 %v5138_v38 }
 0xda3   :  { %4481 = vmatpush1.bf16.msra.mxu0 %v5141_v43 }
 0xda4   :  { %4483 = vmatprep.subr.bf16.mxu0 %v5144_v44 }
 0xda7   :  { %4485 = vmatpush1.bf16.msra.mxu0 %v5147_v49 }
 0xda8   :  { %4511 = vmatprep.subr.bf16.mxu0 %v5390_v21 }
 0xdaa   :  { %3710 = vmatmul.mubr.msk.f32.vlgmr.msra.gmra.mrb[8].mxu0 %vm90_vm2, %v1340_v58  ;;  %v1619_v58 = vld [vmem:[#allocation4 + $0xa0] sm:$0xff] }
 0xdab   :  { %1866 = vmatprep.mubr.f32.mxu0 %v4999_v1  ;;  %4513 = vmatpush1.bf16.msra.mxu0 %v5392_v47  ;;  %v5398_v61 = vpack.c.bf16 %v1621_v59, %v1619_v58  ;;  %v1613_v58 = vld [vmem:[#allocation4 + $0x70] sm:$0xff] }
 0xdac   :  { %4515 = vmatprep.subr.bf16.mxu0 %v5396_v56  ;;  %v5437_v59 = vpack.c.bf16 %v1613_v58, %v1611_v53 }
 0xdaf   :  { %4517 = vmatpush1.bf16.msra.mxu0 %v5398_v61 }
 0xdb0   :  { %4519 = vmatprep.subr.bf16.mxu0 %v5402_v6 }
 0xdb3   :  { %4521 = vmatpush1.bf16.msra.mxu0 %v5404_v10 }
 0xe7d   :  { %v1562_v13 = vpop.f32.mrb[8].mxu0 }
 0xe7e   :  { %v1567_v27 = vadd.f32 %v1562_v13, %v5167_v55  ;;  %v1564_v14 = vpop.f32.mrb[9].mxu0  ;;  %v1628_v13 = vld [vmem:[#allocation4 + $0xe8] sm:$0xff] }
 0xe7f   :  { %v1568_v29 = vadd.f32 %v1564_v14, %v5171_v2 }
 0xe80   :  { %v3711_v15 = vmul.f32 -1.442695, %v1567_v27  ;;  %v1630_v27 = vld [vmem:[#allocation4 + $0xf8] sm:$0xff] }
 0xe81   :  { %v3712_v49 = vmul.f32 -1.442695, %v1568_v29  ;;  %v5408_v14 = vpack.c.bf16 %v1630_v27, %v1628_v13 }
 0xe82   :  { %4878 = vpow2.f32 %v3711_v15  ;;  %v1627_v15 = vld [vmem:[#allocation4 + $0xe0] sm:$0xff] }
 0xe83   :  { %4880 = vtanh.f32 %v1568_v29  ;;  %v1629_v29 = vld [vmem:[#allocation4 + $0xf0] sm:$0xff]  ;;  %4523 = vmatprep.subr.bf16.mxu0 %v5408_v14 }
 0xe8c   :  { %v4879_v37 = vpop.eup %4878 }
 0xe8d   :  { %v1575_v38 = vadd.f32 1.0, %v4879_v37  ;;  %v4881_v43 = vpop.eup %4880  ;;  %v5410_v37 = vpack.c.bf16 %v1629_v29, %v1627_v15 }
 0xe8f   :  { %4882 = vrcp.f32 %v1575_v38  ;;  %4525 = vmatpush1.bf16.msra.mxu0 %v5410_v37  ;;  %v1600_v38 = vld [vmem:[#allocation4 + $0x8] sm:$0xff] }
 0xe90   :  { %4884 = vpow2.f32 %v3712_v49 }
 0xe99   :  { %v4883_v44 = vpop.eup %4882 }
 0xe9a   :  { %v1583_v48 = vmul.f32 %v4883_v44, %v4881_v43  ;;  %v4885_v17 = vpop.eup %4884  ;;  %v1582_v19 = vmul.f32 %v4883_v44, %v5295_v26  ;;  %v1602_v43 = vld [vmem:[#allocation4 + $0x18] sm:$0xff] }
 0xe9b   :  { %v1576_v51 = vadd.f32 1.0, %v4885_v17  ;;  %v5414_v44 = vpack.c.bf16 %v1602_v43, %v1600_v38 }
 0xe9c   :  { %1585 = vrot.lane.b32.xlu0 %v1583_v48, %s5000_s2 }
 0xe9d   :  { %4886 = vrcp.f32 %v1576_v51  ;;  %4527 = vmatprep.subr.bf16.mxu0 %v5414_v44 }
 0xea0   :  { %1634 = vrot.lane.b32.xlu0 %v3714_v22, %s5001_s28  ;;  %v1606_v22 = vld [vmem:[#allocation4 + $0x38] sm:$0xff] }
 0xea7   :  { %v4887_v57 = vpop.eup %4886 }
 0xf0e   :  { %v1586_v54 = vpop.permute.xlu0 %1585 }
 0xf0f   :  { %v5346_v20 = vadd.f32 %v1586_v54, %v1582_v19  ;;  %v1599_v54 = vld [vmem:[#allocation4] sm:$0xff] }
 0xf11   :  { %4888 = vtanh.f32 %v5346_v20 }
 0xf12   :  { %v1635_v32 = vpop.permute.xlu0 %1634 }
 0xf13   :  { %v1637_v36 = vsel %vm88_vm1, %v3713_v28, %v1635_v32  ;;  %v1605_v28 = vld [vmem:[#allocation4 + $0x30] sm:$0xff]  ;;  %v1608_v32 = vld [vmem:[#allocation4 + $0x48] sm:$0xff] }
 0xf1b   :  { %v4889_v60 = vpop.eup %4888 }
 0xf1c   :  { %v1590_v63 = vmul.f32 %v4889_v60, %v4887_v57  ;;  %v1601_v57 = vld [vmem:[#allocation4 + $0x10] sm:$0xff] }
 0xf1e   :  { %1592 = vrot.lane.b32.xlu1 %v1590_v63, %s5000_s2  ;;  %v1604_v63 = vld [vmem:[#allocation4 + $0x28] sm:$0xff] }
 0xf90   :  { %v5354_v4 = vpop.permute.xlu1 %1592 }
 0xf91   :  { %1596 = vst.msk [vmem:[#allocation2 + $0x6] sm:$0x3] %vm458_vm3, %v5354_v4  ;;  %1598 = vst.msk [vmem:[#allocation3 + $0x8] sm:$0x3] %vm458_vm3, %v5354_v4  ;;  %4089 = vmatmul.mubr.msk.f32.vlgmr.msra.gmra.mrb[14].mxu1 %vm90_vm2, %v5354_v4 }
 0xf92   :  { %4500 = vmatpush3.bf16.msra.mxu1 %v5067_v23  ;;  %4107 = vmatprep.mubr.msk.f32.mxu1 %vm4998_vm0, %v4999_v1 }
 0xf93   :  { %4501 = vmatprep.subr.bf16.mxu1 %v4997_v0 }
 0xf96   :  { %4503 = vmatpush3.bf16.msra.mxu1 %v5071_v30 }
 0xf97   :  { %4504 = vmatprep.subr.bf16.mxu1 %v4997_v0 }
 0xf9a   :  { %4506 = vmatpush3.bf16.msra.mxu1 %v5073_v31 }
 0xf9b   :  { %4507 = vmatprep.subr.bf16.mxu1 %v4997_v0 }
 0xf9e   :  { %4509 = vmatpush3.bf16.msra.mxu1 %v5077_v34 }
 0xf9f   :  { %4542 = vmatprep.subr.bf16.mxu1 %v4997_v0 }
0x1064   :  { %v1706_v8 = vpop.f32.mrb[14].mxu1 }
0x1065   :  { %v3716_v12 = vmul.f32 -1.442695, %v1706_v8  ;;  %v4090_v24 = vpop.f32.mrb[15].mxu1 }
0x1067   :  { %4890 = vpow2.f32 %v3716_v12  ;;  %v5417_v12 = vpack.c.bf16 %v1601_v57, %v1599_v54 }
0x1071   :  { %v4891_v25 = vpop.eup %4890 }
0x1072   :  { %v1713_v26 = vadd.f32 1.0, %v4891_v25  ;;  %v5420_v25 = vpack.c.bf16 %v1606_v22, %v1604_v63  ;;  %v3724_v63 = vld [vmem:[%s5687_s0 + $0x4] sm:$0x3] }
0x1074   :  { %4892 = vrcp.f32 %v1713_v26  ;;  %v1603_v26 = vld [vmem:[#allocation4 + $0x20] sm:$0xff] }
0x107e   :  { %v4893_v35 = vpop.eup %4892 }
0x107f   :  { %v1716_v39 = vmul.f32 2.0, %v4893_v35  ;;  %v1610_v35 = vld [vmem:[#allocation4 + $0x58] sm:$0xff] }
0x1081   :  { %v5376_v33 = vmul.f32 %v1716_v39, %v1637_v36  ;;  %v5424_v36 = vpack.c.bf16 %v1605_v28, %v1603_v26  ;;  %v5428_v39 = vpack.c.bf16 %v1610_v35, %v1608_v32  ;;  %v3723_v32 = vld [vmem:[%s5687_s0 + $0xa] sm:$0x3] }
0x1083   :  { %4108 = vmatmul.mubr.msk.f32.vlgmr.msra.gmra.mrb[16].mxu1 %vm90_vm2, %v5376_v33 }
0x1084   :  { %4544 = vmatpush3.bf16.msra.mxu1 %v5042_v5  ;;  %4126 = vmatprep.mubr.msk.f32.mxu1 %vm4998_vm0, %v4999_v1 }
0x1085   :  { %4545 = vmatprep.subr.bf16.mxu1 %v4997_v0 }
0x1088   :  { %4547 = vmatpush3.bf16.msra.mxu1 %v5045_v11 }
0x1089   :  { %4548 = vmatprep.subr.bf16.mxu1 %v4997_v0 }
0x108c   :  { %4550 = vmatpush3.bf16.msra.mxu1 %v5051_v16 }
0x108d   :  { %4551 = vmatprep.subr.bf16.mxu1 %v4997_v0 }
0x1090   :  { %4553 = vmatpush3.bf16.msra.mxu1 %v5060_v18 }
0x1091   :  { %4554 = vmatprep.subr.bf16.mxu1 %v4997_v0 }
0x1156   :  { %v1787_v48 = vpop.f32.mrb[16].mxu1 }
0x1157   :  { %v3718_v49 = vmul.f32 -1.442695, %v1787_v48  ;;  %v4109_v17 = vpop.f32.mrb[17].mxu1 }
0x1159   :  { %4894 = vpow2.f32 %v3718_v49 }
0x1163   :  { %v4895_v51 = vpop.eup %4894 }
0x1164   :  { %v1794_v19 = vadd.f32 1.0, %v4895_v51 }
0x1166   :  { %4896 = vrcp.f32 %v1794_v19 }
0x1170   :  { %v4897_v60 = vpop.eup %4896 }
0x1171   :  { %v1797_v8 = vmul.f32 2.0, %v4897_v60 }
0x1173   :  { %v1798_v24 = vmul.f32 %v1797_v8, %v5354_v4  ;;  %v1609_v4 = vld [vmem:[#allocation4 + $0x50] sm:$0xff] }
0x1174   :  { %v5431_v46 = vpack.c.bf16 %v1609_v4, %v1607_v40 }
0x1175   :  { %3719 = vmatmul.mubr.msk.f32.vlgmr.msra.gmra.mrb[10].mxu0 %vm90_vm2, %v1798_v24 }
0x1176   :  { %4529 = vmatpush1.bf16.msra.mxu0 %v5417_v12  ;;  %1937 = vmatprep.mubr.f32.mxu0 %v4999_v1 }
0x1177   :  { %4531 = vmatprep.subr.bf16.mxu0 %v5420_v25 }
0x117a   :  { %4533 = vmatpush1.bf16.msra.mxu0 %v5424_v36 }
0x117b   :  { %4535 = vmatprep.subr.bf16.mxu0 %v5428_v39 }
0x117e   :  { %4537 = vmatpush1.bf16.msra.mxu0 %v5431_v46 }
0x117f   :  { %4539 = vmatprep.subr.bf16.mxu0 %v5434_v52 }
0x1182   :  { %4541 = vmatpush1.bf16.msra.mxu0 %v5437_v59 }
0x1183   :  { %4567 = vmatprep.subr.bf16.mxu0 %v5390_v21 }
0x1185   :  { %3720 = vmatmul.mubr.msk.f32.vlgmr.msra.gmra.mrb[10].mxu0 %vm90_vm2, %v5376_v33 }
0x1186   :  { %4569 = vmatpush1.bf16.msra.mxu0 %v5392_v47  ;;  %2243 = vmatprep.mubr.f32.mxu0 %v4999_v1 }
0x1187   :  { %4571 = vmatprep.subr.bf16.mxu0 %v5396_v56 }
0x118a   :  { %4573 = vmatpush1.bf16.msra.mxu0 %v5398_v61 }
0x118b   :  { %4575 = vmatprep.subr.bf16.mxu0 %v5402_v6 }
0x118e   :  { %4577 = vmatpush1.bf16.msra.mxu0 %v5404_v10 }
0x118f   :  { %4579 = vmatprep.subr.bf16.mxu0 %v5408_v14 }
0x1192   :  { %4581 = vmatpush1.bf16.msra.mxu0 %v5410_v37 }
0x1193   :  { %4583 = vmatprep.subr.bf16.mxu0 %v5414_v44 }
0x1258   :  { %v1939_v62 = vpop.f32.mrb[10].mxu0 }
0x1259   :  { %v1944_v33 = vadd.f32 %v1939_v62, %v5167_v55  ;;  %v1941_v3 = vpop.f32.mrb[11].mxu0 }
0x125a   :  { %v1945_v9 = vadd.f32 %v1941_v3, %v5171_v2 }
0x125b   :  { %v3721_v7 = vmul.f32 -1.442695, %v1944_v33 }
0x125c   :  { %v3722_v43 = vmul.f32 -1.442695, %v1945_v9 }
0x125d   :  { %4898 = vpow2.f32 %v3721_v7 }
0x125e   :  { %4900 = vtanh.f32 %v1945_v9 }
0x1267   :  { %v4899_v13 = vpop.eup %4898 }
0x1268   :  { %v1952_v27 = vadd.f32 1.0, %v4899_v13  ;;  %v4901_v15 = vpop.eup %4900 }
0x126a   :  { %4902 = vrcp.f32 %v1952_v27 }
0x126b   :  { %4904 = vpow2.f32 %v3722_v43 }
0x1274   :  { %v4903_v29 = vpop.eup %4902 }
0x1275   :  { %v1960_v38 = vmul.f32 %v4903_v29, %v4901_v15  ;;  %v4905_v48 = vpop.eup %4904  ;;  %v1959_v17 = vmul.f32 %v4903_v29, %v5346_v20 }
0x1276   :  { %v1953_v49 = vadd.f32 1.0, %v4905_v48 }
0x1277   :  { %1962 = vrot.lane.b32.xlu1 %v1960_v38, %s5000_s2 }
0x1278   :  { %4906 = vrcp.f32 %v1953_v49 }
0x127b   :  { %2011 = vrot.lane.b32.xlu1 %v3724_v63, %s5001_s28 }
0x1282   :  { %v4907_v54 = vpop.eup %4906 }
0x12e9   :  { %v1963_v51 = vpop.permute.xlu1 %1962 }
0x12ea   :  { %v5457_v19 = vadd.f32 %v1963_v51, %v1959_v17 }
0x12ec   :  { %4908 = vtanh.f32 %v5457_v19 }
0x12ed   :  { %v2012_v35 = vpop.permute.xlu1 %2011 }
0x12ee   :  { %v2014_v4 = vsel %vm88_vm1, %v3723_v32, %v2012_v35  ;;  %v3734_v32 = vld [vmem:[%s5687_s0 + $0x2] sm:$0x3] }
0x12f6   :  { %v4909_v57 = vpop.eup %4908 }
0x12f7   :  { %v1967_v60 = vmul.f32 %v4909_v57, %v4907_v54 }
0x12f9   :  { %1969 = vrot.lane.b32.xlu0 %v1967_v60, %s5000_s2 }
0x136b   :  { %v1970_v22 = vpop.permute.xlu0 %1969 }
0x136c   :  { %1973 = vst.msk [vmem:[#allocation2 + $0x8] sm:$0x3] %vm458_vm3, %v1970_v22  ;;  %1975 = vst.msk [vmem:[#allocation3 + $0x6] sm:$0x3] %vm458_vm3, %v1970_v22  ;;  %4127 = vmatmul.mubr.msk.f32.vlgmr.msra.gmra.mrb[18].mxu1 %vm90_vm2, %v1970_v22 }
0x136d   :  { %4556 = vmatpush3.bf16.msra.mxu1 %v5067_v23  ;;  %4145 = vmatprep.mubr.msk.f32.mxu1 %vm4998_vm0, %v4999_v1 }
0x136e   :  { %4557 = vmatprep.subr.bf16.mxu1 %v4997_v0 }
0x1371   :  { %4559 = vmatpush3.bf16.msra.mxu1 %v5071_v30 }
0x1372   :  { %4560 = vmatprep.subr.bf16.mxu1 %v4997_v0 }
0x1375   :  { %4562 = vmatpush3.bf16.msra.mxu1 %v5073_v31 }
0x1376   :  { %4563 = vmatprep.subr.bf16.mxu1 %v4997_v0 }
0x1379   :  { %4565 = vmatpush3.bf16.msra.mxu1 %v5077_v34 }
0x137a   :  { %4598 = vmatprep.subr.bf16.mxu1 %v4997_v0 }
0x143f   :  { %v2083_v20 = vpop.f32.mrb[18].mxu1 }
0x1440   :  { %v3726_v8 = vmul.f32 -1.442695, %v2083_v20  ;;  %v4128_v24 = vpop.f32.mrb[19].mxu1 }
0x1442   :  { %4910 = vpow2.f32 %v3726_v8 }
0x144c   :  { %v4911_v26 = vpop.eup %4910 }
0x144d   :  { %v2090_v28 = vadd.f32 1.0, %v4911_v26 }
0x144f   :  { %4912 = vrcp.f32 %v2090_v28 }
0x1459   :  { %v4913_v40 = vpop.eup %4912 }
0x145a   :  { %v2093_v41 = vmul.f32 2.0, %v4913_v40 }
0x145c   :  { %v2094_v42 = vmul.f32 %v2093_v41, %v2014_v4 }
0x145e   :  { %4146 = vmatmul.mubr.msk.f32.vlgmr.msra.gmra.mrb[20].mxu1 %vm90_vm2, %v2094_v42 }
0x145f   :  { %4600 = vmatpush3.bf16.msra.mxu1 %v5042_v5  ;;  %4164 = vmatprep.mubr.msk.f32.mxu1 %vm4998_vm0, %v4999_v1 }
0x1460   :  { %4601 = vmatprep.subr.bf16.mxu1 %v4997_v0 }
0x1463   :  { %4603 = vmatpush3.bf16.msra.mxu1 %v5045_v11 }
0x1464   :  { %4604 = vmatprep.subr.bf16.mxu1 %v4997_v0 }
0x1467   :  { %4606 = vmatpush3.bf16.msra.mxu1 %v5051_v16 }
0x1468   :  { %4607 = vmatprep.subr.bf16.mxu1 %v4997_v0 }
0x146b   :  { %4609 = vmatpush3.bf16.msra.mxu1 %v5060_v18 }
0x146c   :  { %4610 = vmatprep.subr.bf16.mxu1 %v4997_v0 }
0x1531   :  { %v2164_v53 = vpop.f32.mrb[20].mxu1 }
0x1532   :  { %v3728_v58 = vmul.f32 -1.442695, %v2164_v53  ;;  %v4147_v62 = vpop.f32.mrb[21].mxu1  ;;  %v3733_v53 = vld [vmem:[%s5687_s0 + $0xc] sm:$0x3] }
0x1534   :  { %4914 = vpow2.f32 %v3728_v58 }
0x153e   :  { %v4915_v33 = vpop.eup %4914 }
0x153f   :  { %v2171_v3 = vadd.f32 1.0, %v4915_v33 }
0x1541   :  { %4916 = vrcp.f32 %v2171_v3 }
0x154b   :  { %v4917_v7 = vpop.eup %4916 }
0x154c   :  { %v2174_v9 = vmul.f32 2.0, %v4917_v7 }
0x154e   :  { %v2175_v13 = vmul.f32 %v2174_v9, %v1970_v22 }
0x1550   :  { %3729 = vmatmul.mubr.msk.f32.vlgmr.msra.gmra.mrb[12].mxu0 %vm90_vm2, %v2175_v13 }
0x1551   :  { %4585 = vmatpush1.bf16.msra.mxu0 %v5417_v12  ;;  %2314 = vmatprep.mubr.f32.mxu0 %v4999_v1 }
0x1552   :  { %4587 = vmatprep.subr.bf16.mxu0 %v5420_v25 }
0x1555   :  { %4589 = vmatpush1.bf16.msra.mxu0 %v5424_v36 }
0x1556   :  { %4591 = vmatprep.subr.bf16.mxu0 %v5428_v39 }
0x1559   :  { %4593 = vmatpush1.bf16.msra.mxu0 %v5431_v46 }
0x155a   :  { %4595 = vmatprep.subr.bf16.mxu0 %v5434_v52 }
0x155d   :  { %4597 = vmatpush1.bf16.msra.mxu0 %v5437_v59 }
0x155e   :  { %4623 = vmatprep.subr.bf16.mxu0 %v5390_v21 }
0x1560   :  { %3730 = vmatmul.mubr.msk.f32.vlgmr.msra.gmra.mrb[12].mxu0 %vm90_vm2, %v2094_v42 }
0x1561   :  { %4625 = vmatpush1.bf16.msra.mxu0 %v5392_v47  ;;  %2620 = vmatprep.mubr.f32.mxu0 %v4999_v1 }
0x1562   :  { %4627 = vmatprep.subr.bf16.mxu0 %v5396_v56 }
0x1565   :  { %4629 = vmatpush1.bf16.msra.mxu0 %v5398_v61 }
0x1566   :  { %4631 = vmatprep.subr.bf16.mxu0 %v5402_v6 }
0x1569   :  { %4633 = vmatpush1.bf16.msra.mxu0 %v5404_v10 }
0x156a   :  { %4635 = vmatprep.subr.bf16.mxu0 %v5408_v14 }
0x156d   :  { %4637 = vmatpush1.bf16.msra.mxu0 %v5410_v37 }
0x156e   :  { %4639 = vmatprep.subr.bf16.mxu0 %v5414_v44 }
0x1633   :  { %v2316_v27 = vpop.f32.mrb[12].mxu0 }
0x1634   :  { %v2321_v15 = vadd.f32 %v2316_v27, %v5167_v55  ;;  %v2318_v29 = vpop.f32.mrb[13].mxu0 }
0x1635   :  { %v2322_v43 = vadd.f32 %v2318_v29, %v5171_v2 }
0x1636   :  { %v3731_v38 = vmul.f32 -1.442695, %v2321_v15 }
0x1637   :  { %v3732_v57 = vmul.f32 -1.442695, %v2322_v43 }
0x1638   :  { %4918 = vpow2.f32 %v3731_v38 }
0x1639   :  { %4920 = vtanh.f32 %v2322_v43 }
0x1642   :  { %v4919_v48 = vpop.eup %4918 }
0x1643   :  { %v2329_v49 = vadd.f32 1.0, %v4919_v48  ;;  %v4921_v17 = vpop.eup %4920 }
0x1645   :  { %4922 = vrcp.f32 %v2329_v49 }
0x1646   :  { %4924 = vpow2.f32 %v3732_v57 }
0x164f   :  { %v4923_v51 = vpop.eup %4922 }
0x1650   :  { %v2337_v54 = vmul.f32 %v4923_v51, %v4921_v17  ;;  %v4925_v60 = vpop.eup %4924  ;;  %v2336_v22 = vmul.f32 %v4923_v51, %v5457_v19 }
0x1651   :  { %v2330_v63 = vadd.f32 1.0, %v4925_v60 }
0x1652   :  { %2339 = vrot.lane.b32.xlu0 %v2337_v54, %s5000_s2 }
0x1653   :  { %4926 = vrcp.f32 %v2330_v63  ;;  %v2763_v63 = vld [vmem:[%s5687_s0] sm:$0x3] }
0x1656   :  { %2388 = vrot.lane.b32.xlu0 %v3734_v32, %s5001_s28 }
0x165d   :  { %v4927_v24 = vpop.eup %4926 }
0x16c4   :  { %v2340_v20 = vpop.permute.xlu0 %2339 }
0x16c5   :  { %v5517_v8 = vadd.f32 %v2340_v20, %v2336_v22 }
0x16c7   :  { %4928 = vtanh.f32 %v5517_v8 }
0x16c8   :  { %v2389_v58 = vpop.permute.xlu0 %2388 }
0x16c9   :  { %v2391_v33 = vsel %vm88_vm1, %v3733_v53, %v2389_v58 }
0x16d1   :  { %v4929_v26 = vpop.eup %4928 }
0x16d2   :  { %v2344_v28 = vmul.f32 %v4929_v26, %v4927_v24 }
0x16d4   :  { %2346 = vrot.lane.b32.xlu1 %v2344_v28, %s5000_s2  ;;  %v3743_v28 = vld [vmem:[%s5687_s0 + $0xe] sm:$0x3]  ;;  %s5002_s0 = smov 120  }
0x1746   :  { %v2347_v35 = vpop.permute.xlu1 %2346 }
0x1747   :  { %2350 = vst.msk [vmem:[#allocation2 + $0xa] sm:$0x3] %vm458_vm3, %v2347_v35  ;;  %2352 = vst.msk [vmem:[#allocation3 + $0x4] sm:$0x3] %vm458_vm3, %v2347_v35  ;;  %4165 = vmatmul.mubr.msk.f32.vlgmr.msra.gmra.mrb[22].mxu1 %vm90_vm2, %v2347_v35 }
0x1748   :  { %4612 = vmatpush3.bf16.msra.mxu1 %v5067_v23  ;;  %4183 = vmatprep.mubr.msk.f32.mxu1 %vm4998_vm0, %v4999_v1 }
0x1749   :  { %4613 = vmatprep.subr.bf16.mxu1 %v4997_v0 }
0x174c   :  { %4615 = vmatpush3.bf16.msra.mxu1 %v5071_v30 }
0x174d   :  { %4616 = vmatprep.subr.bf16.mxu1 %v4997_v0 }
0x1750   :  { %4618 = vmatpush3.bf16.msra.mxu1 %v5073_v31 }
0x1751   :  { %4619 = vmatprep.subr.bf16.mxu1 %v4997_v0 }
0x1754   :  { %4621 = vmatpush3.bf16.msra.mxu1 %v5077_v34 }
0x1755   :  { %4654 = vmatprep.subr.bf16.mxu1 %v4997_v0 }
0x181a   :  { %v2460_v19 = vpop.f32.mrb[22].mxu1 }
0x181b   :  { %v3736_v40 = vmul.f32 -1.442695, %v2460_v19  ;;  %v4166_v4 = vpop.f32.mrb[23].mxu1 }
0x181d   :  { %4930 = vpow2.f32 %v3736_v40 }
0x1827   :  { %v4931_v41 = vpop.eup %4930 }
0x1828   :  { %v2467_v42 = vadd.f32 1.0, %v4931_v41 }
0x182a   :  { %4932 = vrcp.f32 %v2467_v42 }
0x1834   :  { %v4933_v62 = vpop.eup %4932 }
0x1835   :  { %v2470_v3 = vmul.f32 2.0, %v4933_v62 }
0x1837   :  { %v2471_v7 = vmul.f32 %v2470_v3, %v2391_v33 }
0x1839   :  { %4184 = vmatmul.mubr.msk.f32.vlgmr.msra.gmra.mrb[24].mxu1 %vm90_vm2, %v2471_v7 }
0x183a   :  { %4656 = vmatpush3.bf16.msra.mxu1 %v5042_v5  ;;  %4202 = vmatprep.mubr.msk.f32.mxu1 %vm4998_vm0, %v4999_v1 }
0x183b   :  { %4657 = vmatprep.subr.bf16.mxu1 %v4997_v0 }
0x183e   :  { %4659 = vmatpush3.bf16.msra.mxu1 %v5045_v11 }
0x183f   :  { %4660 = vmatprep.subr.bf16.mxu1 %v4997_v0 }
0x1842   :  { %4662 = vmatpush3.bf16.msra.mxu1 %v5051_v16 }
0x1843   :  { %4663 = vmatprep.subr.bf16.mxu1 %v4997_v0 }
0x1846   :  { %4665 = vmatpush3.bf16.msra.mxu1 %v5060_v18 }
0x1847   :  { %4666 = vmatprep.subr.bf16.mxu1 %v4997_v0 }
0x190c   :  { %v2541_v9 = vpop.f32.mrb[24].mxu1 }
0x190d   :  { %v3738_v13 = vmul.f32 -1.442695, %v2541_v9  ;;  %v4185_v5 = vpop.f32.mrb[25].mxu1 }
0x190e   :  { %v5629_v5 = vld [vmem:[#allocation4 + $0x168] sm:$0xff] }
0x190f   :  { %4934 = vpow2.f32 %v3738_v13 }
0x1919   :  { %v4935_v27 = vpop.eup %4934 }
0x191a   :  { %v2548_v15 = vadd.f32 1.0, %v4935_v27  ;;  %v5631_v27 = vld [vmem:[#allocation4 + $0x178] sm:$0xff] }
0x191c   :  { %4936 = vrcp.f32 %v2548_v15  ;;  %v4805_v15 = vpack.i.bf16 %v5631_v27, %v5629_v5 }
0x1926   :  { %v4937_v29 = vpop.eup %4936 }
0x1927   :  { %v2551_v38 = vmul.f32 2.0, %v4937_v29 }
0x1929   :  { %v2552_v11 = vmul.f32 %v2551_v38, %v2347_v35 }
0x192b   :  { %3739 = vmatmul.mubr.msk.f32.vlgmr.msra.gmra.mrb[14].mxu0 %vm90_vm2, %v2552_v11 }
0x192c   :  { %4641 = vmatpush1.bf16.msra.mxu0 %v5417_v12  ;;  %2691 = vmatprep.mubr.f32.mxu0 %v4999_v1 }
0x192d   :  { %4643 = vmatprep.subr.bf16.mxu0 %v5420_v25 }
0x1930   :  { %4645 = vmatpush1.bf16.msra.mxu0 %v5424_v36 }
0x1931   :  { %4647 = vmatprep.subr.bf16.mxu0 %v5428_v39 }
0x1934   :  { %4649 = vmatpush1.bf16.msra.mxu0 %v5431_v46 }
0x1935   :  { %4651 = vmatprep.subr.bf16.mxu0 %v5434_v52 }
0x1938   :  { %4653 = vmatpush1.bf16.msra.mxu0 %v5437_v59 }
0x1939   :  { %4679 = vmatprep.subr.bf16.mxu0 %v5390_v21 }
0x193b   :  { %3740 = vmatmul.mubr.msk.f32.vlgmr.msra.gmra.mrb[14].mxu0 %vm90_vm2, %v2471_v7  ;;  %v5622_v7 = vld [vmem:[#allocation4 + $0x138] sm:$0xff] }
0x193c   :  { %4681 = vmatpush1.bf16.msra.mxu0 %v5392_v47  ;;  %2997 = vmatprep.mubr.f32.mxu0 %v4999_v1 }
0x193d   :  { %4683 = vmatprep.subr.bf16.mxu0 %v5396_v56 }
0x1940   :  { %4685 = vmatpush1.bf16.msra.mxu0 %v5398_v61 }
0x1941   :  { %4687 = vmatprep.subr.bf16.mxu0 %v5402_v6 }
0x1944   :  { %4689 = vmatpush1.bf16.msra.mxu0 %v5404_v10 }
0x1945   :  { %4691 = vmatprep.subr.bf16.mxu0 %v5408_v14 }
0x1948   :  { %4693 = vmatpush1.bf16.msra.mxu0 %v5410_v37 }
0x1949   :  { %4695 = vmatprep.subr.bf16.mxu0 %v5414_v44 }
0x1a0e   :  { %v2693_v16 = vpop.f32.mrb[14].mxu0 }
0x1a0f   :  { %v2698_v18 = vadd.f32 %v2693_v16, %v5167_v55  ;;  %v2695_v21 = vpop.f32.mrb[15].mxu0 }
0x1a10   :  { %v2699_v56 = vadd.f32 %v2695_v21, %v5171_v2 }
0x1a11   :  { %v3741_v47 = vmul.f32 -1.442695, %v2698_v18 }
0x1a12   :  { %v3742_v14 = vmul.f32 -1.442695, %v2699_v56 }
0x1a13   :  { %4938 = vpow2.f32 %v3741_v47 }
0x1a14   :  { %4940 = vtanh.f32 %v2699_v56 }
0x1a1d   :  { %v4939_v43 = vpop.eup %4938 }
0x1a1e   :  { %v2706_v61 = vadd.f32 1.0, %v4939_v43  ;;  %v4941_v6 = vpop.eup %4940 }
0x1a20   :  { %4942 = vrcp.f32 %v2706_v61 }
0x1a21   :  { %4944 = vpow2.f32 %v3742_v14 }
0x1a2a   :  { %v4943_v10 = vpop.eup %4942 }
0x1a2b   :  { %v2714_v48 = vmul.f32 %v4943_v10, %v4941_v6  ;;  %v4945_v37 = vpop.eup %4944  ;;  %v2713_v49 = vmul.f32 %v4943_v10, %v5517_v8 }
0x1a2c   :  { %v2707_v44 = vadd.f32 1.0, %v4945_v37 }
0x1a2d   :  { %2716 = vrot.lane.b32.xlu1 %v2714_v48, %s5000_s2 }
0x1a2e   :  { %4946 = vrcp.f32 %v2707_v44 }
0x1a31   :  { %2765 = vrot.lane.b32.xlu1 %v2763_v63, %s5001_s28 }
0x1a38   :  { %v4947_v54 = vpop.eup %4946 }
0x1a9f   :  { %v2717_v17 = vpop.permute.xlu1 %2716 }
0x1aa0   :  { %v5577_v51 = vadd.f32 %v2717_v17, %v2713_v49  ;;  %v3110_v49 = vld [vmem:[#allocation4 + $0x148] sm:$0xff]  ;;  %v3111_v17 = vld [vmem:[#allocation4 + $0x158] sm:$0xff] }
0x1aa2   :  { %4948 = vtanh.f32 %v5577_v51 }
0x1aac   :  { %v4949_v57 = vpop.eup %4948 }
0x1aad   :  { %v2721_v60 = vmul.f32 %v4949_v57, %v4947_v54  ;;  %v4800_v57 = vpack.i.bf16 %v3111_v17, %v3110_v49 }
0x1aaf   :  { %2723 = vrot.lane.b32.xlu0 %v2721_v60, %s5000_s2 }
0x1b21   :  { %v2724_v22 = vpop.permute.xlu0 %2723 }
0x1b22   :  { %2727 = vst.msk [vmem:[#allocation2 + $0xc] sm:$0x3] %vm458_vm3, %v2724_v22  ;;  %2729 = vst.msk [vmem:[#allocation3 + $0x2] sm:$0x3] %vm458_vm3, %v2724_v22  ;;  %4203 = vmatmul.mubr.msk.f32.vlgmr.msra.gmra.mrb[26].mxu1 %vm90_vm2, %v2724_v22 }
0x1b23   :  { %4668 = vmatpush3.bf16.msra.mxu1 %v5067_v23  ;;  %4221 = vmatprep.mubr.msk.f32.mxu1 %vm4998_vm0, %v4999_v1 }
0x1b24   :  { %4669 = vmatprep.subr.bf16.mxu1 %v4997_v0 }
0x1b27   :  { %4671 = vmatpush3.bf16.msra.mxu1 %v5071_v30  ;;  %v2766_v30 = vpop.permute.xlu1 %2765 }
0x1b28   :  { %4672 = vmatprep.subr.bf16.mxu1 %v4997_v0  ;;  %v2768_v35 = vsel %vm88_vm1, %v3743_v28, %v2766_v30 }
0x1b2b   :  { %4674 = vmatpush3.bf16.msra.mxu1 %v5073_v31 }
0x1b2c   :  { %4675 = vmatprep.subr.bf16.mxu1 %v4997_v0 }
0x1b2f   :  { %4677 = vmatpush3.bf16.msra.mxu1 %v5077_v34 }
0x1bf5   :  { %v2837_v20 = vpop.f32.mrb[26].mxu1 }
0x1bf6   :  { %v3745_v8 = vmul.f32 -1.442695, %v2837_v20  ;;  %v4204_v24 = vpop.f32.mrb[27].mxu1 }
0x1bf8   :  { %4950 = vpow2.f32 %v3745_v8 }
0x1c02   :  { %v4951_v23 = vpop.eup %4950 }
0x1c03   :  { %v2844_v26 = vadd.f32 1.0, %v4951_v23  ;;  %v3125_v23 = vld [vmem:[#allocation3 + $0x4] sm:$0x3] }
0x1c05   :  { %4952 = vrcp.f32 %v2844_v26  ;;  %v3127_v26 = vld [vmem:[#allocation3 + $0x8] sm:$0x3] }
0x1c0f   :  { %v4953_v32 = vpop.eup %4952 }
0x1c10   :  { %v2847_v31 = vmul.f32 2.0, %v4953_v32 }
0x1c12   :  { %v2848_v19 = vmul.f32 %v2847_v31, %v2768_v35  ;;  %v3118_v35 = vld [vmem:[#allocation2 + $0x6] sm:$0x3]  ;;  %v3126_v31 = vld [vmem:[#allocation3 + $0x6] sm:$0x3] }
0x1c14   :  { %4222 = vmatmul.mubr.msk.f32.vlgmr.msra.gmra.mrb[28].mxu1 %vm90_vm2, %v2848_v19 }
0x1ce7   :  { %v2918_v0 = vpop.f32.mrb[28].mxu1 }
0x1ce8   :  { %v3747_v34 = vmul.f32 -1.442695, %v2918_v0  ;;  %v4223_v40 = vpop.f32.mrb[29].mxu1  ;;  %v3129_v0 = vld [vmem:[#allocation3 + $0xc] sm:$0x3] }
0x1cea   :  { %4954 = vpow2.f32 %v3747_v34 }
0x1cf4   :  { %v4955_v4 = vpop.eup %4954 }
0x1cf5   :  { %v2925_v41 = vadd.f32 1.0, %v4955_v4  ;;  %v3140_v4 = vcombine.low %v3125_v23, %v3126_v31 }
0x1cf7   :  { %4956 = vrcp.f32 %v2925_v41 }
0x1d01   :  { %v4957_v42 = vpop.eup %4956 }
0x1d02   :  { %v2928_v53 = vmul.f32 2.0, %v4957_v42  ;;  %v3116_v42 = vld [vmem:[#allocation2 + $0x2] sm:$0x3] }
0x1d04   :  { %v2929_v58 = vmul.f32 %v2928_v53, %v2724_v22  ;;  %v3117_v53 = vld [vmem:[#allocation2 + $0x4] sm:$0x3] }
0x1d06   :  { %3748 = vmatmul.mubr.msk.f32.vlgmr.msra.gmra.mrb[16].mxu0 %vm90_vm2, %v2929_v58 }
0x1d07   :  { %4697 = vmatpush1.bf16.msra.mxu0 %v5417_v12  ;;  %3068 = vmatprep.mubr.f32.mxu0 %v4999_v1 }
0x1d08   :  { %4699 = vmatprep.subr.bf16.mxu0 %v5420_v25 }
0x1d0b   :  { %4701 = vmatpush1.bf16.msra.mxu0 %v5424_v36 }
0x1d0c   :  { %4703 = vmatprep.subr.bf16.mxu0 %v5428_v39  ;;  %v5614_v39 = vld [vmem:[#allocation4 + $0x108] sm:$0xff] }
0x1d0f   :  { %4705 = vmatpush1.bf16.msra.mxu0 %v5431_v46  ;;  %v5616_v46 = vld [vmem:[#allocation4 + $0x118] sm:$0xff] }
0x1d10   :  { %4707 = vmatprep.subr.bf16.mxu0 %v5434_v52  ;;  %v5618_v52 = vld [vmem:[#allocation4 + $0x128] sm:$0xff] }
0x1d13   :  { %4709 = vmatpush1.bf16.msra.mxu0 %v5437_v59  ;;  %v4790_v59 = vpack.i.bf16 %v5616_v46, %v5614_v39 }
0x1d15   :  { %4791 = vrot.lane.b32.xlu1 %v4790_v59, %s5002_s0 }
0x1d16   :  { %3749 = vmatmul.mubr.msk.f32.vlgmr.msra.gmra.mrb[16].mxu0 %vm90_vm2, %v2848_v19  ;;  %v3128_v19 = vld [vmem:[#allocation3 + $0xa] sm:$0x3] }
0x1d17   :  { %v3156_v41 = vcombine.low %v3127_v26, %v3128_v19 }
0x1d87   :  { %v4792_v38 = vpop.permute.xlu1 %4791 }
0x1d88   :  { %v4794_v11 = vunpack.i.h.bf16 %v4792_v38  ;;  %v4793_v16 = vunpack.i.l.bf16 %v4792_v38 }
0x1d8a   :  { %v4710_v21 = vpack.c.bf16 %v4794_v11, %v4793_v16 }
0x1d8c   :  { %4711 = vmatprep.subr.bf16.mxu1 %v4710_v21 }
0x1d8d   :  { %4713 = vmatpush3.bf16.msra.mxu1 %v4710_v21 }
0x1de9   :  { %v3070_v62 = vpop.f32.mrb[16].mxu0 }
0x1dea   :  { %v3075_v33 = vadd.f32 %v3070_v62, %v5167_v55  ;;  %v3072_v12 = vpop.f32.mrb[17].mxu0  ;;  %v4795_v55 = vpack.i.bf16 %v5622_v7, %v5618_v52  ;;  %v3124_v62 = vld [vmem:[#allocation3 + $0x2] sm:$0x3] }
0x1deb   :  { %v3076_v1 = vadd.f32 %v3072_v12, %v5171_v2  ;;  %v3293_v12 = vcombine.low %v3117_v53, %v3118_v35  ;;  %v5661_v53 = vand.u32 127, %v39_v50 }
0x1dec   :  { %v3750_v3 = vmul.f32 -1.442695, %v3075_v33  ;;  %4796 = vrot.lane.b32.xlu1 %v4795_v55, %s5002_s0  ;;  %v3130_v33 = vld [vmem:[#allocation3 + $0xe] sm:$0x3] }
0x1ded   :  { %v3751_v29 = vmul.f32 -1.442695, %v3076_v1 }
0x1dee   :  { %4958 = vpow2.f32 %v3750_v3 }
0x1def   :  { %4960 = vtanh.f32 %v3076_v1 }
0x1df0   :  { %4806 = vrot.lane.b32.xlu1 %v4805_v15, %s5002_s0 }
0x1df8   :  { %v4959_v25 = vpop.eup %4958 }
0x1df9   :  { %v3083_v36 = vadd.f32 1.0, %v4959_v25  ;;  %v4961_v2 = vpop.eup %4960  ;;  %v3157_v25 = vcombine.low %v3129_v0, %v3130_v33 }
0x1dfb   :  { %4962 = vrcp.f32 %v3083_v36  ;;  %v3115_v36 = vld [vmem:[#allocation2] sm:$0x3] }
0x1dfc   :  { %4964 = vpow2.f32 %v3751_v29  ;;  %v3292_v59 = vcombine.low %v3115_v36, %v3116_v42 }
0x1e05   :  { %v4963_v9 = vpop.eup %4962 }
0x1e06   :  { %v3091_v13 = vmul.f32 %v4963_v9, %v4961_v2  ;;  %v4965_v18 = vpop.eup %4964  ;;  %v3090_v6 = vmul.f32 %v4963_v9, %v5577_v51  ;;  %v5003_v51 = vmov 1983009808  }
0x1e07   :  { %v3084_v61 = vadd.f32 1.0, %v4965_v18  ;;  %v3142_v22 = vunpack.c.l.s4 %v5003_v51  ;;  %v4730_v18 = vpack.c.bf16 %v5622_v7, %v5618_v52 }
0x1e08   :  { %3093 = vrot.lane.b32.xlu0 %v3091_v13, %s5000_s2  ;;  %v4726_v13 = vpack.c.bf16 %v5616_v46, %v5614_v39  ;;  %v4734_v39 = vpack.c.bf16 %v3111_v17, %v3110_v49  ;;  %v3114_v49 = vld [vmem:[#allocation4 + $0x181] ss:$0 sm:$0xff] }
0x1e09   :  { %4966 = vrcp.f32 %v3084_v61  ;;  %v3143_v28 = vunpack.c.0.s8 %v3142_v22 }
0x1e0b   :  { %v3146_v3 = vsub.s32 %v3143_v28, %v5164_v45 }
0x1e0d   :  { %v3154_v2 = vrot.slane %v3140_v4, %v3146_v3  ;;  %v3164_v9 = vrot.slane %v3156_v41, %v3146_v3  ;;  %v3307_v15 = vrot.slane %v3293_v12, %v3146_v3  ;;  %v3171_v38 = vrot.slane %v3157_v25, %v3146_v3 }
0x1e0e   :  { %v3300_v11 = vrot.slane %v3292_v59, %v3146_v3 }
0x1e0f   :  { %v3172_v16 = vcombine.low %v3164_v9, %v3171_v38 }
0x1e10   :  { %v3308_v21 = vcombine.low %v3300_v11, %v3307_v15 }
0x1e13   :  { %v4967_v37 = vpop.eup %4966 }
0x1e5e   :  { %v4797_v47 = vpop.permute.xlu1 %4796 }
0x1e5f   :  { %v4799_v56 = vunpack.i.h.bf16 %v4797_v47  ;;  %v4798_v43 = vunpack.i.l.bf16 %v4797_v47  ;;  %v3120_v47 = vld [vmem:[#allocation2 + $0xa] sm:$0x3] }
0x1e61   :  { %v4714_v10 = vpack.c.bf16 %v4799_v56, %v4798_v43  ;;  %v3121_v56 = vld [vmem:[#allocation2 + $0xc] sm:$0x3]  ;;  %v4738_v43 = vpack.c.bf16 %v5631_v27, %v5629_v5 }
0x1e62   :  { %v4807_v63 = vpop.permute.xlu1 %4806 }
0x1e63   :  { %4715 = vmatprep.subr.bf16.mxu1 %v4714_v10  ;;  %v4809_v20 = vunpack.i.h.bf16 %v4807_v63  ;;  %v4808_v8 = vunpack.i.l.bf16 %v4807_v63 }
0x1e64   :  { %4717 = vmatpush3.bf16.msra.mxu1 %v4714_v10 }
0x1e65   :  { %v4722_v40 = vpack.c.bf16 %v4809_v20, %v4808_v8 }
0x1e7a   :  { %v3094_v48 = vpop.permute.xlu0 %3093 }
0x1e7b   :  { %v3096_v14 = vadd.f32 %v3094_v48, %v3090_v6  ;;  %v3119_v6 = vld [vmem:[#allocation2 + $0x8] sm:$0x3] }
0x1e7c   :  { %v3309_v10 = vcombine.low %v3119_v6, %v3120_v47 }
0x1e7d   :  { %4968 = vtanh.f32 %v3096_v14 }
0x1e7e   :  { %v3317_v7 = vrot.slane %v3309_v10, %v3146_v3 }
0x1e87   :  { %v4969_v44 = vpop.eup %4968 }
0x1e88   :  { %v3098_v54 = vmul.f32 %v4969_v44, %v4967_v37 }
0x1e8a   :  { %3100 = vrot.lane.b32.xlu0 %v3098_v54, %s5000_s2 }
0x1e8e   :  { %4801 = vrot.lane.b32.xlu0 %v4800_v57, %s5002_s0 }
0x1efc   :  { %v3101_v60 = vpop.permute.xlu0 %3100 }
0x1efd   :  { %3104 = vst.msk [vmem:[#allocation2 + $0xe] sm:$0x3] %vm458_vm3, %v3101_v60  ;;  %3105 = vst.msk [vmem:[#allocation3] sm:$0x3] %vm458_vm3, %v3101_v60 }
0x1f00   :  { %v4802_v24 = vpop.permute.xlu0 %4801 }
0x1f01   :  { %v4804_v30 = vunpack.i.h.bf16 %v4802_v24  ;;  %v4803_v32 = vunpack.i.l.bf16 %v4802_v24 }
0x1f03   :  { %v4718_v34 = vpack.c.bf16 %v4804_v30, %v4803_v32 }
0x1f04   :  { %v3123_v58 = vld [vmem:[#allocation3] sm:$0x3]  ;;  %v3122_v46 = vld [vmem:[#allocation2 + $0xe] sm:$0x3] }
0x1f05   :  { %4719 = vmatprep.subr.bf16.mxu1 %v4718_v34  ;;  %v3139_v1 = vcombine.low %v3123_v58, %v3124_v62  ;;  %v3310_v61 = vcombine.low %v3121_v56, %v3122_v46 }
0x1f06   :  { %4721 = vmatpush3.bf16.msra.mxu1 %v4718_v34 }
0x1f07   :  { %4723 = vmatprep.subr.bf16.mxu1 %v4722_v40  ;;  %v3147_v55 = vrot.slane %v3139_v1, %v3146_v3  ;;  %v3324_v52 = vrot.slane %v3310_v61, %v3146_v3 }
0x1f09   :  { %v3155_v29 = vcombine.low %v3147_v55, %v3154_v2  ;;  %v3325_v48 = vcombine.low %v3317_v7, %v3324_v52 }
0x1f0a   :  { %4725 = vmatpush3.bf16.msra.mxu1 %v4722_v40 }
0x1f0b   :  { %4240 = vmatprep.mubr.msk.f32.mxu1 %vm90_vm2, %v3155_v29  ;;  %4727 = vmatprep.subr.bf16.mxu1 %v4726_v13 }
0x1f0d   :  { %4241 = vmatmul.mubr.msk.f32.vlgmr.msra.gmra.mrb[30].mxu1 %vm90_vm2, %v3172_v16 }
0x1f0e   :  { %4729 = vmatpush3.bf16.msra.mxu1 %v4726_v13  ;;  %4259 = vmatprep.mubr.msk.f32.mxu1 %vm90_vm2, %v3308_v21 }
0x1f0f   :  { %4731 = vmatprep.subr.bf16.mxu1 %v4730_v18 }
0x1f12   :  { %4733 = vmatpush3.bf16.msra.mxu1 %v4730_v18 }
0x1f13   :  { %4735 = vmatprep.subr.bf16.mxu1 %v4734_v39 }
0x1f16   :  { %4737 = vmatpush3.bf16.msra.mxu1 %v4734_v39 }
0x1f17   :  { %4739 = vmatprep.subr.bf16.mxu1 %v4738_v43 }
0x1f1a   :  { %4741 = vmatpush3.bf16.msra.mxu1 %v4738_v43 }
0x1f1d   :  { %4260 = vmatmul.mubr.msk.f32.vlgmr.msra.gmra.mrb[30].mxu1 %vm90_vm2, %v3325_v48 }
0x1ff0   :  { %v4261_v14 = vpop.f32.mrb[30].mxu1 }
0x1ff1   :  { %v3431_v37 = vrot.slane %v4261_v14, %v3146_v3  ;;  %v3396_v44 = vpop.f32.mrb[31].mxu1  ;;  %v3424_v5 = vcombine.high %v4261_v14, %v4261_v14 }
0x1ff2   :  { %v3407_v17 = vcombine.high %v3396_v44, %v3396_v44  ;;  %v3414_v54 = vrot.slane %v3396_v44, %v3146_v3 }
0x1ff3   :  { %v3439_v57 = vcombine.high %v3431_v37, %v3431_v37  ;;  %v3438_v8 = vrot.slane %v3424_v5, %v3146_v3  ;;  %v3453_v23 = vadd.f32 %v3431_v37, %v3114_v49 }
0x1ff4   :  { %v3422_v27 = vcombine.high %v3414_v54, %v3414_v54  ;;  %v3449_v60 = vadd.f32 %v3414_v54, %v3114_v49  ;;  %v3421_v63 = vrot.slane %v3407_v17, %v3146_v3 }
0x1ff5   :  { %v3454_v20 = vadd.f32 %v3439_v57, %v3114_v49  ;;  %v3470_v32 = vsel %vm3457_vm4, %v3453_v23, -inf  ;;  %v3455_v35 = vadd.f32 %v3438_v8, %v3114_v49  ;;  %v3440_v0 = vcombine.high %v3438_v8, %v3438_v8 }
0x1ff6   :  { %v3458_v51 = vsel %vm3457_vm4, %v3449_v60, -inf  ;;  %v3450_v22 = vadd.f32 %v3422_v27, %v3114_v49  ;;  %v3451_v28 = vadd.f32 %v3421_v63, %v3114_v49  ;;  %v3423_v30 = vcombine.high %v3421_v63, %v3421_v63 }
0x1ff7   :  { %3459 = vmax.xlane.f32.xlu0 %v3458_v51  ;;  %v3473_v26 = vsel %vm3457_vm4, %v3454_v20, -inf  ;;  %v3476_v34 = vsel %vm3457_vm4, %v3455_v35, -inf  ;;  %v3456_v4 = vadd.f32 %v3440_v0, %v3114_v49 }
0x1ff8   :  { %v3461_v24 = vsel %vm3457_vm4, %v3450_v22, -inf  ;;  %v3464_v31 = vsel %vm3457_vm4, %v3451_v28, -inf  ;;  %v3452_v19 = vadd.f32 %v3423_v30, %v3114_v49 }
0x1ff9   :  { %3462 = vmax.xlane.f32.xlu1 %v3461_v24  ;;  %v3479_v41 = vsel %vm3457_vm4, %v3456_v4, -inf }
0x1ffa   :  { %v3467_v40 = vsel %vm3457_vm4, %v3452_v19, -inf }
0x1ffb   :  { %3474 = vmax.xlane.f32.xlu0 %v3473_v26 }
0x1ffd   :  { %3471 = vmax.xlane.f32.xlu1 %v3470_v32 }
0x1fff   :  { %3465 = vmax.xlane.f32.xlu0 %v3464_v31 }
0x2001   :  { %3477 = vmax.xlane.f32.xlu1 %v3476_v34 }
0x2003   :  { %3468 = vmax.xlane.f32.xlu0 %v3467_v40 }
0x2007   :  { %3480 = vmax.xlane.f32.xlu0 %v3479_v41 }
0x2084   :  { %v3460_v42 = vpop.xlane.xlu0 %3459 }
0x2085   :  { %vm3484_vm5 = vcmp.ge.f32.partialorder %v3449_v60, %v3460_v42 }
0x2086   :  { %v3463_v58 = vpop.xlane.xlu1 %3462  ;;  %v3492_v12 = vsel %vm3484_vm5, %v5661_v53, 8  ;;  %vm3653_vm5 = vcmask 1041409  }
0x2087   :  { %vm3485_vm6 = vcmp.ge.f32.partialorder %v3450_v22, %v3463_v58  ;;  %v3500_v2 = vsel %vm3457_vm4, %v3492_v12, 2147483647 }
0x2088   :  { %v3493_v62 = vsel %vm3485_vm6, %v5661_v53, 8  ;;  %v3475_v33 = vpop.xlane.xlu0 %3474  ;;  %v3502_v21 = vshra.s32 %v3500_v2, 16  ;;  %v3501_v24 = vand.u32 65535, %v3500_v2  ;;  %vm3655_vm6 = vcmask 1042434  }
0x2089   :  { %vm3489_vm7 = vcmp.ge.f32.partialorder %v3454_v20, %v3475_v33  ;;  %v3515_v25 = vsel %vm3457_vm4, %v3493_v62, 2147483647 }
0x208a   :  { %v3497_v3 = vsel %vm3489_vm7, %v5661_v53, 8  ;;  %v3472_v1 = vpop.xlane.xlu1 %3471  ;;  %v3517_v11 = vshra.s32 %v3515_v25, 16  ;;  %v3504_v6 = vcvt.s32.f32 %v3502_v21  ;;  %v3516_v51 = vand.u32 65535, %v3515_v25 }
0x208b   :  { %v3575_v36 = vsel %vm3457_vm4, %v3497_v3, 2147483647  ;;  %vm3488_vm8 = vcmp.ge.f32.partialorder %v3453_v23, %v3472_v1  ;;  %v3503_v31 = vcvt.s32.f32 %v3501_v24  ;;  %vm3657_vm7 = vcmask 1043459  }
0x208c   :  { %v3496_v50 = vsel %vm3488_vm8, %v5661_v53, 8  ;;  %v3466_v59 = vpop.xlane.xlu0 %3465  ;;  %v3577_v55 = vshra.s32 %v3575_v36, 16  ;;  %v3519_v56 = vcvt.s32.f32 %v3517_v11  ;;  %v3576_v5 = vand.u32 65535, %v3575_v36 }
0x208d   :  { %v3560_v9 = vsel %vm3457_vm4, %v3496_v50, 2147483647  ;;  %vm3486_vm9 = vcmp.ge.f32.partialorder %v3451_v28, %v3466_v59  ;;  %v3518_v28 = vcvt.s32.f32 %v3516_v51  ;;  %vm3659_vm8 = vcmask 1044484  }
0x208e   :  { %v3494_v13 = vsel %vm3486_vm9, %v5661_v53, 8  ;;  %v3478_v15 = vpop.xlane.xlu1 %3477  ;;  %v3579_v29 = vcvt.s32.f32 %v3577_v55  ;;  %v3562_v38 = vshra.s32 %v3560_v9, 16  ;;  %v3561_v27 = vand.u32 65535, %v3560_v9 }
0x208f   :  { %vm3490_vm10 = vcmp.ge.f32.partialorder %v3455_v35, %v3478_v15  ;;  %v3530_v39 = vsel %vm3457_vm4, %v3494_v13, 2147483647  ;;  %v3578_v63 = vcvt.s32.f32 %v3576_v5  ;;  %v3623_v15 = vsub.s32 %v5661_v53, %v5164_v45 }
0x2090   :  { %3580 = vmin.xlane.f32.xlu0 %v3579_v29  ;;  %v3469_v16 = vpop.xlane.xlu0 %3468  ;;  %v3564_v18 = vcvt.s32.f32 %v3562_v38  ;;  %v3498_v46 = vsel %vm3490_vm10, %v5661_v53, 8  ;;  %v3532_v52 = vshra.s32 %v3530_v39, 16  ;;  %v3563_v8 = vcvt.s32.f32 %v3561_v27 }
0x2091   :  { %vm3487_vm11 = vcmp.ge.f32.partialorder %v3452_v19, %v3469_v16  ;;  %v3590_v7 = vsel %vm3457_vm4, %v3498_v46, 2147483647  ;;  %v3531_v19 = vand.u32 65535, %v3530_v39  ;;  %vm3661_vm9 = vcmask 1045509  }
0x2092   :  { %v3495_v47 = vsel %vm3487_vm11, %v5661_v53, 8  ;;  %3565 = vmin.xlane.f32.xlu1 %v3564_v18  ;;  %v3534_v44 = vcvt.s32.f32 %v3532_v52  ;;  %v3592_v17 = vshra.s32 %v3590_v7, 16  ;;  %v3591_v62 = vand.u32 65535, %v3590_v7 }
0x2093   :  { %v3545_v43 = vsel %vm3457_vm4, %v3495_v47, 2147483647  ;;  %v3533_v58 = vcvt.s32.f32 %v3531_v19  ;;  %vm3663_vm10 = vcmask 1046534   ;;  %vm3665_vm11 = vcmask 1047559  }
0x2094   :  { %3520 = vmin.xlane.f32.xlu0 %v3519_v56  ;;  %v3481_v61 = vpop.xlane.xlu0 %3480  ;;  %v3547_v10 = vshra.s32 %v3545_v43, 16  ;;  %v3594_v57 = vcvt.s32.f32 %v3592_v17  ;;  %v3546_v30 = vand.u32 65535, %v3545_v43  ;;  %v3593_v36 = vcvt.s32.f32 %v3591_v62 }
0x2095   :  { %vm3491_vm12 = vcmp.ge.f32.partialorder %v3456_v4, %v3481_v61 }
0x2096   :  { %v3499_v48 = vsel %vm3491_vm12, %v5661_v53, 8  ;;  %3505 = vmin.xlane.f32.xlu1 %v3504_v6  ;;  %v3549_v14 = vcvt.s32.f32 %v3547_v10  ;;  %v3548_v40 = vcvt.s32.f32 %v3546_v30  ;;  %vm3668_vm12 = vcmask 15360  }
0x2097   :  { %v3605_v37 = vsel %vm3457_vm4, %v3499_v48, 2147483647 }
0x2098   :  { %3550 = vmin.xlane.f32.xlu0 %v3549_v14  ;;  %v3607_v49 = vshra.s32 %v3605_v37, 16  ;;  %v3606_v4 = vand.u32 65535, %v3605_v37 }
0x209a   :  { %3535 = vmin.xlane.f32.xlu1 %v3534_v44  ;;  %v3609_v54 = vcvt.s32.f32 %v3607_v49  ;;  %v3608_v3 = vcvt.s32.f32 %v3606_v4 }
0x209c   :  { %3610 = vmin.xlane.f32.xlu0 %v3609_v54 }
0x209e   :  { %3595 = vmin.xlane.f32.xlu1 %v3594_v57 }
0x211d   :  { %v3581_v60 = vpop.xlane.xlu0 %3580 }
0x211e   :  { %vm3582_vm13 = vcmp.eq.f32.partialorder %v3579_v29, %v3581_v60  ;;  %v3587_v59 = vcvt.f32.s32 %v3581_v60 }
0x211f   :  { %v3566_v22 = vpop.xlane.xlu1 %3565  ;;  %v3583_v20 = vsel %vm3582_vm13, %v3578_v63, inf }
0x2120   :  { %3584 = vmin.xlane.f32.xlu0 %v3583_v20  ;;  %vm3567_vm14 = vcmp.eq.f32.partialorder %v3564_v18, %v3566_v22  ;;  %v3572_v55 = vcvt.f32.s32 %v3566_v22  ;;  %v3588_v13 = vshll.u32 %v3587_v59, 16 }
0x2121   :  { %v3521_v23 = vpop.xlane.xlu0 %3520  ;;  %v3568_v26 = vsel %vm3567_vm14, %v3563_v8, inf }
0x2122   :  { %3569 = vmin.xlane.f32.xlu1 %v3568_v26  ;;  %vm3522_vm15 = vcmp.eq.f32.partialorder %v3519_v56, %v3521_v23  ;;  %v3527_v2 = vcvt.f32.s32 %v3521_v23  ;;  %v3573_v11 = vshll.u32 %v3572_v55, 16 }
0x2123   :  { %v3506_v32 = vpop.xlane.xlu1 %3505  ;;  %v3523_v35 = vsel %vm3522_vm15, %v3518_v28, inf }
0x2124   :  { %3524 = vmin.xlane.f32.xlu0 %v3523_v35  ;;  %vm3507_vm0 = vcmp.eq.f32.partialorder %v3504_v6, %v3506_v32  ;;  %v3512_v16 = vcvt.f32.s32 %v3506_v32  ;;  %v3528_v39 = vshll.u32 %v3527_v2, 16 }
0x2125   :  { %v3551_v0 = vpop.xlane.xlu0 %3550  ;;  %v3508_v34 = vsel %vm3507_vm0, %v3503_v31, inf }
0x2126   :  { %3509 = vmin.xlane.f32.xlu1 %v3508_v34  ;;  %vm3552_vm1 = vcmp.eq.f32.partialorder %v3549_v14, %v3551_v0  ;;  %v3557_v47 = vcvt.f32.s32 %v3551_v0  ;;  %v3513_v52 = vshll.u32 %v3512_v16, 16 }
0x2127   :  { %v3536_v41 = vpop.xlane.xlu1 %3535  ;;  %v3553_v42 = vsel %vm3552_vm1, %v3548_v40, inf }
0x2128   :  { %3554 = vmin.xlane.f32.xlu0 %v3553_v42  ;;  %vm3537_vm2 = vcmp.eq.f32.partialorder %v3534_v44, %v3536_v41  ;;  %v3542_v6 = vcvt.f32.s32 %v3536_v41  ;;  %v3558_v45 = vshll.u32 %v3557_v47, 16  ;;  %v3620_v41 = vld [vmem:[%s5688_s1] sm:$0xff] }
0x2129   :  { %v3611_v33 = vpop.xlane.xlu0 %3610  ;;  %v3538_v12 = vsel %vm3537_vm2, %v3533_v58, inf }
0x212a   :  { %3539 = vmin.xlane.f32.xlu1 %v3538_v12  ;;  %vm3612_vm3 = vcmp.eq.f32.partialorder %v3609_v54, %v3611_v33  ;;  %v3543_v17 = vshll.u32 %v3542_v6, 16  ;;  %v3617_v54 = vcvt.f32.s32 %v3611_v33 }
0x212b   :  { %v3596_v1 = vpop.xlane.xlu1 %3595  ;;  %v3613_v25 = vsel %vm3612_vm3, %v3608_v3, inf }
0x212c   :  { %3614 = vmin.xlane.f32.xlu0 %v3613_v25  ;;  %vm3597_vm4 = vcmp.eq.f32.partialorder %v3594_v57, %v3596_v1  ;;  %v3602_v5 = vcvt.f32.s32 %v3596_v1  ;;  %v3618_v23 = vshll.u32 %v3617_v54, 16 }
0x212d   :  { %v3598_v50 = vsel %vm3597_vm4, %v3593_v36, inf }
0x212e   :  { %3599 = vmin.xlane.f32.xlu1 %v3598_v50  ;;  %v3603_v28 = vshll.u32 %v3602_v5, 16 }
0x21ad   :  { %v3585_v9 = vpop.xlane.xlu0 %3584 }
0x21ae   :  { %v3586_v29 = vcvt.f32.s32 %v3585_v9 }
0x21af   :  { %v3570_v38 = vpop.xlane.xlu1 %3569 }
0x21b0   :  { %v3589_v18 = vadd.s32 %v3588_v13, %v3586_v29  ;;  %v3571_v21 = vcvt.f32.s32 %v3570_v38 }
0x21b1   :  { %v3525_v46 = vpop.xlane.xlu0 %3524 }
0x21b2   :  { %v3644_v56 = vrot.slane %v3589_v18, %v3623_v15  ;;  %v3574_v43 = vadd.s32 %v3573_v11, %v3571_v21  ;;  %v3526_v61 = vcvt.f32.s32 %v3525_v46 }
0x21b3   :  { %v3510_v10 = vpop.xlane.xlu1 %3509 }
0x21b4   :  { %v3640_v7 = vrot.slane %v3574_v43, %v3623_v15  ;;  %v3529_v48 = vadd.s32 %v3528_v39, %v3526_v61  ;;  %v3511_v14 = vcvt.f32.s32 %v3510_v10 }
0x21b5   :  { %v3555_v37 = vpop.xlane.xlu0 %3554 }
0x21b6   :  { %v3628_v53 = vrot.slane %v3529_v48, %v3623_v15  ;;  %v3514_v44 = vadd.s32 %v3513_v52, %v3511_v14  ;;  %v3556_v49 = vcvt.f32.s32 %v3555_v37 }
0x21b7   :  { %v3540_v57 = vpop.xlane.xlu1 %3539 }
0x21b8   :  { %v3624_v27 = vrot.slane %v3514_v44, %v3623_v15  ;;  %v3559_v60 = vadd.s32 %v3558_v45, %v3556_v49  ;;  %v3541_v63 = vcvt.f32.s32 %v3540_v57 }
0x21b9   :  { %v3615_v51 = vpop.xlane.xlu0 %3614 }
0x21ba   :  { %v3654_v22 = vsel %vm3653_vm5, %v3628_v53, %v3624_v27  ;;  %v3636_v20 = vrot.slane %v3559_v60, %v3623_v15  ;;  %v3544_v8 = vadd.s32 %v3543_v17, %v3541_v63  ;;  %v3616_v24 = vcvt.f32.s32 %v3615_v51 }
0x21bb   :  { %v3600_v26 = vpop.xlane.xlu1 %3599 }
0x21bc   :  { %v3632_v30 = vrot.slane %v3544_v8, %v3623_v15  ;;  %v3601_v32 = vcvt.f32.s32 %v3600_v26  ;;  %v3619_v35 = vadd.s32 %v3618_v23, %v3616_v24 }
0x21be   :  { %v3656_v31 = vsel %vm3655_vm6, %v3632_v30, %v3654_v22  ;;  %v3604_v19 = vadd.s32 %v3603_v28, %v3601_v32  ;;  %v3652_v4 = vrot.slane %v3619_v35, %v3623_v15 }
0x21bf   :  { %v3658_v0 = vsel %vm3657_vm7, %v3636_v20, %v3656_v31 }
0x21c0   :  { %v3648_v34 = vrot.slane %v3604_v19, %v3623_v15  ;;  %v3660_v40 = vsel %vm3659_vm8, %v3640_v7, %v3658_v0 }
0x21c1   :  { %v3662_v42 = vsel %vm3661_vm9, %v3644_v56, %v3660_v40 }
0x21c2   :  { %v3664_v58 = vsel %vm3663_vm10, %v3648_v34, %v3662_v42 }
0x21c3   :  { %v3666_v62 = vsel %vm3665_vm11, %v3652_v4, %v3664_v58 }
0x21c4   :  { %v3667_v33 = vmul.u32 %v3666_v62, %v3620_v41 }
0x21c6   :  { %3669 = vst.msk [vmem:[%s5690_s3] sm:$0xff] %vm3668_vm12, %v3667_v33 }
0x21c7   :  { %3674 = vsyncpa [#allocation5], 1 }

</bundles_post_ra>
